<compile_context>
chip_gen: v7x
topology: tpu7x:2x2x1
jax: 0.10.0
libtpu: 0.0.40
codegen_flags: <defaults>
</compile_context>

<pallas_src>
import numpy as np

import jax
import jax.numpy as jnp
from jax.experimental import pallas as pl
from jax.experimental.pallas import tpu as pltpu

_LANES = 128


def _bilinear_matrix_align_corners(out_size: int, in_size: int) -> np.ndarray:
    """Interpolation matrix A (out_size, in_size) s.t. y = A @ x matches
    F.interpolate(mode='bilinear', align_corners=True) along one axis."""
    if in_size == 1:
        return np.ones((out_size, 1), dtype=np.float32)
    if out_size == 1:
        src = np.zeros((1,), dtype=np.float32)
    else:
        src = np.arange(out_size, dtype=np.float32) * ((in_size - 1) / (out_size - 1))
    i0 = np.clip(np.floor(src).astype(np.int32), 0, in_size - 2)
    i1 = i0 + 1
    w1 = src - i0.astype(np.float32)
    w0 = 1.0 - w1
    A = np.zeros((out_size, in_size), dtype=np.float32)
    rows = np.arange(out_size)
    A[rows, i0] += w0
    A[rows, i1] += w1
    return A


def _vmem_capacity_bytes() -> int:
    """Generation-aware VMEM capacity (64 MiB on v7x, 128 MiB on v5e/v6e)."""
    try:
        return int(pltpu.get_tpu_info().vmem_capacity_bytes)
    except Exception:
        return 64 * 1024 * 1024


def _build_kernel(level_meta, tH, W, bb, norm, q, eps, matmul_dtype, mask_is_binary):
    """Per (batch block, row tile) kernel computing masked per-pixel loss sums for ALL levels."""
    any_vr = any(m["vr"] is not None for m in level_meta)

    def kernel(*refs):
        gt_ref, mask_ref = refs[0], refs[1]
        out_ref = refs[-1]

        # Unpack per-level refs: identity levels carry just pred, others pred + A_h + A_wT.
        lrefs = []
        idx = 2
        for meta in level_meta:
            if meta["identity"]:
                lrefs.append((refs[idx], None, None))
                idx += 1
            else:
                lrefs.append((refs[idx], refs[idx + 1], refs[idx + 2]))
                idx += 3

        lane_id = jax.lax.broadcasted_iota(jnp.int32, (1, 1, _LANES), 2)

        def per_batch(bi, acc):
            # Ground-truth row tile for this batch element, NaN-cleaned in-kernel.
            g = gt_ref[bi].astype(jnp.float32)            # (2, tH, W)
            g = jnp.where(jnp.isnan(g), 0.0, g)
            gt0, gt1 = g[0], g[1]
            if any_vr:
                abs0 = jnp.abs(gt0)                       # hoisted out of the level loop
                abs1 = jnp.abs(gt1)
            if mask_is_binary:
                keep_base = mask_ref[bi].astype(jnp.int32) != 0
            else:
                mskf = mask_ref[bi].astype(jnp.float32)

            for li, (meta, (pred_ref, ah_ref, awt_ref)) in enumerate(zip(level_meta, lrefs)):
                if meta["identity"]:
                    # Full-resolution level: align_corners bilinear resize is the identity and
                    # sx == sy == 1 -> no MXU work, no A matrices resident in VMEM.
                    p = pred_ref[bi].astype(jnp.float32)  # (2, tH, W)
                    up0, up1 = p[0], p[1]
                else:
                    p = pred_ref[bi].astype(matmul_dtype)     # (2, hl, wl)
                    ah = ah_ref[...]                          # (tH, hl) in matmul_dtype (bf16 fast path)
                    # Second matmul stays f32: the f32-accumulated intermediate is not
                    # re-quantized to bf16 (mixed precision, per the correctness review).
                    awt = awt_ref[...].astype(jnp.float32)    # (wl, W)
                    t0 = jnp.dot(ah, p[0], preferred_element_type=jnp.float32)   # (tH, wl) f32
                    t1 = jnp.dot(ah, p[1], preferred_element_type=jnp.float32)   # (tH, wl) f32
                    if meta["fuse"]:
                        # Fuse both channels into one (2*tH, wl) @ (wl, W) matmul (better MXU fill).
                        t = jnp.concatenate([t0, t1], axis=0)                      # (2*tH, wl)
                        up = jnp.dot(t, awt, preferred_element_type=jnp.float32)   # (2*tH, W)
                        up0 = up[:tH] * meta["sx"]
                        up1 = up[tH:] * meta["sy"]
                    else:
                        up0 = jnp.dot(t0, awt, preferred_element_type=jnp.float32) * meta["sx"]
                        up1 = jnp.dot(t1, awt, preferred_element_type=jnp.float32) * meta["sy"]

                du = up0 - gt0
                dv = up1 - gt1
                if norm == "l2":
                    lm = jnp.sqrt(du * du + dv * dv)
                else:
                    lm = jnp.abs(du) + jnp.abs(dv)
                    if norm == "robust":
                        # (lm + eps) ** q via exp/log (EUP ops, guaranteed Mosaic lowering).
                        lm = jnp.exp(q * jnp.log(lm + eps))

                vr = meta["vr"]
                if mask_is_binary:
                    keep = keep_base
                    if vr is not None:
                        # Index order mirrors ezflow: |target_x| <= vr[1], |target_y| <= vr[0].
                        keep = keep & (abs0 <= vr[1]) & (abs1 <= vr[0])
                    lm = jnp.where(keep, lm, 0.0)          # one select instead of cast + 2 muls
                else:
                    if vr is not None:
                        lm = jnp.where((abs0 <= vr[1]) & (abs1 <= vr[0]), lm, 0.0)
                    lm = lm * mskf                          # non-binary mask: stay faithful (multiply)

                acc = acc + jnp.where(lane_id == li, jnp.sum(lm), 0.0)
            return acc

        acc0 = jnp.zeros((1, 1, _LANES), jnp.float32)
        if bb == 1:
            acc = per_batch(0, acc0)
        else:
            # fori_loop bounds the live range of the per-element (tH, W) intermediates.
            acc = jax.lax.fori_loop(0, bb, per_batch, acc0)
        out_ref[...] = acc

    return kernel


def multiscale_loss(
    flow_preds,
    flow_gt,
    my_mask,
    norm="l1",
    q=0.4,
    eps=0.01,
    weights=(1, 0.5, 0.25),
    average="mean",
    resize_flow="upsample",
    extra_mask=None,
    use_valid_range=True,
    valid_range=None,
    matmul_dtype=jnp.bfloat16,   # bf16 A matrices + first matmul (f32 accumulate, f32 second matmul);
                                 # pass jnp.float32 for bit-close numerics
    batch_block=None,            # optional override: batch elements per grid step (must divide B)
    row_tile=None,               # optional override: row-tile height (divides H; multiple of 8 or == H)
):
    """JAX/Pallas equivalent of MultiScaleLoss.forward (resize_flow='upsample')."""
    norm = norm.lower()
    average = average.lower()
    resize_flow = resize_flow.lower()
    assert norm in ("l1", "l2", "robust")
    assert average in ("mean", "sum")
    if resize_flow != "upsample":
        raise NotImplementedError  # TODO(synk): 'downsample' (adaptive_avg_pool2d of gt) not implemented
    if extra_mask is not None:
        raise NotImplementedError  # TODO(synk): boolean-indexed extra_mask changes the mean denominator; no clean Pallas equivalent

    if not isinstance(flow_preds, (tuple, list, set)):
        flow_preds = (flow_preds,)
    flow_preds = list(flow_preds)
    n_levels = len(flow_preds)

    B, C, H, W = flow_gt.shape
    assert C == 2
    assert len(weights) >= n_levels, "need one weight per pyramid level"
    assert n_levels <= _LANES, "lane-scatter output supports at most 128 levels"

    mask = my_mask
    mask_is_binary = bool(
        jnp.issubdtype(mask.dtype, jnp.bool_) or jnp.issubdtype(mask.dtype, jnp.integer)
    )
    if mask.dtype == jnp.bool_:
        mask = mask.astype(jnp.int8)  # keep the wire narrow; compared against 0 in-kernel

    # ---- per-level static metadata ---------------------------------------------------
    level_meta = []
    for i, pred in enumerate(flow_preds):
        _, _, hl, wl = pred.shape
        vr = None
        if use_valid_range and valid_range is not None:
            vr = (float(valid_range[i][0]), float(valid_range[i][1]))
        level_meta.append(
            dict(
                hl=int(hl),
                wl=int(wl),
                sx=float(W) / float(wl),
                sy=float(H) / float(hl),
                identity=(hl == H and wl == W),
                vr=vr,
            )
        )

    mat_itemsize = jnp.dtype(matmul_dtype).itemsize
    gt_item = flow_gt.dtype.itemsize
    msk_item = mask.dtype.itemsize

    def live_bytes(bb_, th_):
        # Double-buffered input blocks.
        inp = bb_ * 2 * th_ * W * gt_item + bb_ * th_ * W * msk_item
        for m, p in zip(level_meta, flow_preds):
            if m["identity"]:
                inp += bb_ * 2 * th_ * W * p.dtype.itemsize
            else:
                inp += bb_ * 2 * m["hl"] * m["wl"] * p.dtype.itemsize
                inp += (th_ * m["hl"] + m["wl"] * W) * mat_itemsize
        # Per-bi live intermediates (fori_loop bounds them to one batch element, but the
        # static level unroll can keep several levels' temporaries live -> scale by n_levels).
        inter = (6 + 6 * n_levels) * th_ * W * 4
        for m in level_meta:
            if not m["identity"]:
                inter += 4 * th_ * m["wl"] * 4
        return 2 * inp + inter + 2 * _LANES * 4

    vmem_cap = _vmem_capacity_bytes()
    budget = int(0.4 * vmem_cap)

    # ---- pick (batch block, row tile) from the live-set footprint ----------------------
    if row_tile is not None:
        rt = int(row_tile)
        assert H % rt == 0 and (rt % 8 == 0 or rt == H)
        tile_cands = [rt]
    else:
        tile_cands = [t for t in range(H, 0, -1) if H % t == 0 and (t % 8 == 0 or t == H)]

    if batch_block is not None:
        bbc = int(batch_block)
        assert B % bbc == 0
        batch_cands = [bbc]
    elif B == 1:
        batch_cands = [1]
    else:
        # Keep >= 2 grid steps along the batch axis (v7x megacore) and cap the fold at 4.
        batch_cands = [b for b in range(min(4, B // 2), 0, -1) if B % b == 0]

    bb, tH = batch_cands[-1], tile_cands[-1]
    found = False
    for t in tile_cands:
        for b_ in batch_cands:
            if live_bytes(b_, t) <= budget:
                bb, tH = b_, t
                found = True
                break
        if found:
            break
    # If nothing fits, fall back to the smallest candidates (best effort).
    # TODO(synk): add a W column-tile grid axis for resolutions where even that overflows VMEM.

    for m in level_meta:
        m["fuse"] = (tH % 8 == 0)  # aligned row-concat of the two channel intermediates

    num_blocks = B // bb
    num_row_tiles = H // tH
    need = live_bytes(bb, tH)
    vmem_limit = int(min(int(0.92 * vmem_cap), max(48 * 1024 * 1024, 2 * need)))

    # ---- assemble inputs / spec descriptors -------------------------------------------
    in_arrays = [flow_gt, mask]
    # (block_shape, index_map, grid_invariant) per input
    spec_entries = [
        ((bb, 2, tH, W), lambda g, r: (g, 0, r, 0), False),
        ((bb, tH, W), lambda g, r: (g, r, 0), False),
    ]
    for m, pred in zip(level_meta, flow_preds):
        in_arrays.append(pred)
        if m["identity"]:
            spec_entries.append(((bb, 2, tH, W), lambda g, r: (g, 0, r, 0), False))
        else:
            spec_entries.append(((bb, 2, m["hl"], m["wl"]), lambda g, r: (g, 0, 0, 0), False))
            ah = jnp.asarray(_bilinear_matrix_align_corners(H, m["hl"]), dtype=matmul_dtype)
            awt = jnp.asarray(_bilinear_matrix_align_corners(W, m["wl"]).T, dtype=matmul_dtype)
            in_arrays += [ah, awt]
            spec_entries.append(((tH, m["hl"]), lambda g, r: (r, 0), num_row_tiles == 1))
            spec_entries.append(((m["wl"], W), lambda g, r: (0, 0), True))

    kernel = _build_kernel(level_meta, tH, W, bb, norm, q, eps, matmul_dtype, mask_is_binary)
    out_shape = jax.ShapeDtypeStruct((num_blocks * num_row_tiles, 1, _LANES), jnp.float32)
    out_spec = pl.BlockSpec((1, 1, _LANES), lambda g, r: (g * num_row_tiles + r, 0, 0))

    def _run(single_buffer_consts):
        in_specs = []
        for shape, imap, const_like in spec_entries:
            if single_buffer_consts and const_like:
                # Grid-invariant interpolation matrices: no need to double-buffer them.
                in_specs.append(pl.BlockSpec(shape, imap, pipeline_mode=pl.Buffered(1)))
            else:
                in_specs.append(pl.BlockSpec(shape, imap))
        fn = pl.pallas_call(
            kernel,
            out_shape=out_shape,
            grid_spec=pltpu.PrefetchScalarGridSpec(
                num_scalar_prefetch=0,
                grid=(num_blocks, num_row_tiles),
                in_specs=in_specs,
                out_specs=out_spec,
            ),
            compiler_params=pltpu.CompilerParams(
                dimension_semantics=("parallel", "parallel"),  # independent partial sums per block
                vmem_limit_bytes=vmem_limit,
            ),
        )
        return jax.block_until_ready(fn(*in_arrays))

    out = None
    if hasattr(pl, "Buffered") and any(e[2] for e in spec_entries):
        try:
            out = _run(True)
        except Exception:
            out = None  # fall back to default double-buffered A matrices
    if out is None:
        out = _run(False)

    # ---- trivial scalar glue in plain JAX ----------------------------------------------
    level_sums = jnp.sum(out[:, 0, :n_levels], axis=0)  # (n_levels,)
    total = jnp.float32(0.0)
    for i in range(n_levels):
        wgt = float(weights[i])
        if average == "mean":
            total = total + level_sums[i] * (wgt / float(B * H * W))
        else:  # "sum"
            total = total + level_sums[i] * (wgt / float(B))
    return total / float(n_levels)


def _reference_loss(flow_preds, flow_gt, my_mask, norm="l1", q=0.4, eps=0.01,
                    weights=(1, 0.5, 0.25), average="mean",
                    use_valid_range=True, valid_range=None):
    """Pure-JAX reference mirroring MultiScaleLoss.forward (upsample path)."""
    B, _, H, W = flow_gt.shape
    gt = jnp.where(jnp.isnan(flow_gt), 0.0, flow_gt).astype(jnp.float32)
    m = my_mask.astype(jnp.float32)
    total = jnp.float32(0.0)
    for i, pred in enumerate(flow_preds):
        _, _, hl, wl = pred.shape
        A_h = jnp.asarray(_bilinear_matrix_align_corners(H, hl))
        A_w = jnp.asarray(_bilinear_matrix_align_corners(W, wl))
        up = jnp.einsum("Hh,bchw,Ww->bcHW", A_h, pred.astype(jnp.float32), A_w,
                        precision=jax.lax.Precision.HIGHEST)
        scale = jnp.array([W / wl, H / hl], jnp.float32).reshape(1, 2, 1, 1)
        up = up * scale
        d = up - gt
        if norm == "l2":
            lm = jnp.sqrt(jnp.sum(d * d, axis=1))
        else:
            lm = jnp.sum(jnp.abs(d), axis=1)
            if norm == "robust":
                lm = (lm + eps) ** q
        if use_valid_range and valid_range is not None:
            vm = ((jnp.abs(gt[:, 0]) <= valid_range[i][1])
                  & (jnp.abs(gt[:, 1]) <= valid_range[i][0])).astype(jnp.float32)
            lm = lm * vm
        lm = lm * m
        if average == "mean":
            level = lm.mean() * weights[i]
        else:
            level = lm.sum() / B * weights[i]
        total = total + level
    return total / len(flow_preds)


def _check(got, want, rtol, name):
    got = float(got)
    want = float(want)
    assert np.isfinite(got), name
    assert abs(got - want) <= rtol * max(1.0, abs(want)), (name, got, want)


if __name__ == "__main__":
    key = jax.random.PRNGKey(0)
    B, C, H, W = 2, 2, 16, 16

    k_gt, k_m, k0, k1, k2 = jax.random.split(key, 5)
    flow_gt = jax.random.normal(k_gt, (B, C, H, W), dtype=jnp.float32) * 3.0
    flow_gt = flow_gt.at[0, 0, 3, 5].set(jnp.nan)  # exercise the in-kernel NaN cleaning
    my_mask = (jax.random.uniform(k_m, (B, H, W)) > 0.2).astype(jnp.int8)  # narrow wire dtype

    # Three pyramid levels: full res (identity -> no matmuls), 1/2, 1/4.
    flow_preds = [
        jax.random.normal(k0, (B, C, 16, 16), dtype=jnp.float32),
        jax.random.normal(k1, (B, C, 8, 8), dtype=jnp.float32),
        jax.random.normal(k2, (B, C, 4, 4), dtype=jnp.float32),
    ]

    # 1) Module defaults (l1 / mean / upsample), exact f32 matmul path.
    ref1 = _reference_loss(flow_preds, flow_gt, my_mask)
    got_f32 = jax.block_until_ready(
        multiscale_loss(flow_preds, flow_gt, my_mask, matmul_dtype=jnp.float32))
    _check(got_f32, ref1, 2e-3, "l1/mean/f32")

    # 2) Default bf16 fast path (bf16 A matrices + first matmul, f32 accumulate/second matmul).
    got_bf16 = jax.block_until_ready(multiscale_loss(flow_preds, flow_gt, my_mask))
    _check(got_bf16, ref1, 2e-2, "l1/mean/bf16")

    # 3) valid_range + 'sum' averaging.
    vr = [[10.0, 10.0], [5.0, 5.0], [2.5, 2.5]]
    ref2 = _reference_loss(flow_preds, flow_gt, my_mask, average="sum",
                           use_valid_range=True, valid_range=vr)
    got2 = jax.block_until_ready(
        multiscale_loss(flow_preds, flow_gt, my_mask, average="sum",
                        use_valid_range=True, valid_range=vr, matmul_dtype=jnp.float32))
    _check(got2, ref2, 2e-3, "valid_range/sum/f32")

    # 4) Robust norm, multi-batch-block (fori_loop path) + multi-row-tile (blocked A_h) path.
    B4 = 4
    kg, km, ka, kb, kc = jax.random.split(jax.random.PRNGKey(1), 5)
    gt4 = jax.random.normal(kg, (B4, 2, H, W), dtype=jnp.float32) * 2.0
    m4 = (jax.random.uniform(km, (B4, H, W)) > 0.1).astype(jnp.int8)
    preds4 = [
        jax.random.normal(ka, (B4, 2, 16, 16), dtype=jnp.float32),
        jax.random.normal(kb, (B4, 2, 8, 8), dtype=jnp.float32),
        jax.random.normal(kc, (B4, 2, 4, 4), dtype=jnp.float32),
    ]
    ref3 = _reference_loss(preds4, gt4, m4, norm="robust")
    got3 = jax.block_until_ready(
        multiscale_loss(preds4, gt4, m4, norm="robust", matmul_dtype=jnp.float32,
                        batch_block=2, row_tile=8))
    _check(got3, ref3, 2e-3, "robust/tiled")

    print("KERNEL_OK")
</pallas_src>

<mosaic_0001>
module attributes {stable_mosaic.version = 11 : i64} {
  func.func @kernel(%arg0: i32, %arg1: i32, %arg2: memref<1x2x16x16xf32, #tpu.memory_space<vmem>>, %arg3: memref<1x16x16xi8, #tpu.memory_space<vmem>>, %arg4: memref<1x2x16x16xf32, #tpu.memory_space<vmem>>, %arg5: memref<1x2x8x8xf32, #tpu.memory_space<vmem>>, %arg6: memref<16x8xf32, #tpu.memory_space<vmem>>, %arg7: memref<8x16xf32, #tpu.memory_space<vmem>>, %arg8: memref<1x2x4x4xf32, #tpu.memory_space<vmem>>, %arg9: memref<16x4xf32, #tpu.memory_space<vmem>>, %arg10: memref<4x16xf32, #tpu.memory_space<vmem>>, %arg11: memref<1x1x128xf32, #tpu.memory_space<vmem>>) attributes {dimension_semantics = [#tpu.dimension_semantics<parallel>, #tpu.dimension_semantics<parallel>], iteration_bounds = array<i64: 2, 1>, scalar_prefetch = 0 : i64, scratch_operands = 0 : i64, tpu.core_type = #tpu.core_type<tc>, window_params = [{transform_indices = @transform_0, window_bounds = array<i64: 1, 2, 16, 16>}, {transform_indices = @transform_1, window_bounds = array<i64: 1, 16, 16>}, {transform_indices = @transform_2, window_bounds = array<i64: 1, 2, 16, 16>}, {transform_indices = @transform_3, window_bounds = array<i64: 1, 2, 8, 8>}, {pipeline_mode = #tpu.pipeline_mode<synchronous>, transform_indices = @transform_4, window_bounds = array<i64: 16, 8>}, {pipeline_mode = #tpu.pipeline_mode<synchronous>, transform_indices = @transform_5, window_bounds = array<i64: 8, 16>}, {transform_indices = @transform_6, window_bounds = array<i64: 1, 2, 4, 4>}, {pipeline_mode = #tpu.pipeline_mode<synchronous>, transform_indices = @transform_7, window_bounds = array<i64: 16, 4>}, {pipeline_mode = #tpu.pipeline_mode<synchronous>, transform_indices = @transform_8, window_bounds = array<i64: 4, 16>}, {transform_indices = @transform_9, window_bounds = array<i64: 1, 1, 128>}]} {
    %0 = tpu.iota {dimensions = array<i32: 2>} : vector<1x1x128xi32>
    %cst = arith.constant 0.000000e+00 : f32
    %1 = vector.broadcast %cst : f32 to vector<1x1x128xf32>
    %c0 = arith.constant 0 : index
    %c0_0 = arith.constant 0 : index
    %c0_1 = arith.constant 0 : index
    %c0_2 = arith.constant 0 : index
    %2 = vector.load %arg2[%c0, %c0_0, %c0_1, %c0_2] : memref<1x2x16x16xf32, #tpu.memory_space<vmem>>, vector<1x2x16x16xf32>
    %3 = vector.shape_cast %2 : vector<1x2x16x16xf32> to vector<2x16x16xf32>
    %4 = arith.cmpf one, %3, %3 : vector<2x16x16xf32>
    %cst_3 = arith.constant 0.000000e+00 : f32
    %5 = vector.broadcast %cst_3 : f32 to vector<2x16x16xf32>
    %6 = arith.select %4, %5, %3 : vector<2x16x16xi1>, vector<2x16x16xf32>
    %7 = vector.extract_strided_slice %6 {offsets = [0, 0, 0], sizes = [1, 16, 16], strides = [1, 1, 1]} : vector<2x16x16xf32> to vector<1x16x16xf32>
    %8 = vector.shape_cast %7 : vector<1x16x16xf32> to vector<16x16xf32>
    %9 = vector.extract_strided_slice %6 {offsets = [1, 0, 0], sizes = [1, 16, 16], strides = [1, 1, 1]} : vector<2x16x16xf32> to vector<1x16x16xf32>
    %10 = vector.shape_cast %9 : vector<1x16x16xf32> to vector<16x16xf32>
    %c0_4 = arith.constant 0 : index
    %c0_5 = arith.constant 0 : index
    %c0_6 = arith.constant 0 : index
    %11 = vector.load %arg3[%c0_4, %c0_5, %c0_6] : memref<1x16x16xi8, #tpu.memory_space<vmem>>, vector<1x16x16xi8>
    %12 = vector.shape_cast %11 : vector<1x16x16xi8> to vector<16x16xi8>
    %13 = arith.extsi %12 : vector<16x16xi8> to vector<16x16xi32>
    %c0_i32 = arith.constant 0 : i32
    %14 = vector.broadcast %c0_i32 : i32 to vector<16x16xi32>
    %15 = arith.cmpi ne, %13, %14 : vector<16x16xi32>
    %c0_7 = arith.constant 0 : index
    %c0_8 = arith.constant 0 : index
    %c0_9 = arith.constant 0 : index
    %c0_10 = arith.constant 0 : index
    %16 = vector.load %arg4[%c0_7, %c0_8, %c0_9, %c0_10] : memref<1x2x16x16xf32, #tpu.memory_space<vmem>>, vector<1x2x16x16xf32>
    %17 = vector.shape_cast %16 : vector<1x2x16x16xf32> to vector<2x16x16xf32>
    %18 = vector.extract_strided_slice %17 {offsets = [0, 0, 0], sizes = [1, 16, 16], strides = [1, 1, 1]} : vector<2x16x16xf32> to vector<1x16x16xf32>
    %19 = vector.shape_cast %18 : vector<1x16x16xf32> to vector<16x16xf32>
    %20 = vector.extract_strided_slice %17 {offsets = [1, 0, 0], sizes = [1, 16, 16], strides = [1, 1, 1]} : vector<2x16x16xf32> to vector<1x16x16xf32>
    %21 = vector.shape_cast %20 : vector<1x16x16xf32> to vector<16x16xf32>
    %22 = arith.subf %19, %8 : vector<16x16xf32>
    %23 = arith.subf %21, %10 : vector<16x16xf32>
    %24 = math.absf %22 : vector<16x16xf32>
    %25 = math.absf %23 : vector<16x16xf32>
    %26 = arith.addf %24, %25 : vector<16x16xf32>
    %cst_11 = arith.constant 0.000000e+00 : f32
    %27 = vector.broadcast %cst_11 : f32 to vector<16x16xf32>
    %28 = arith.select %15, %26, %27 : vector<16x16xi1>, vector<16x16xf32>
    %c0_i32_12 = arith.constant 0 : i32
    %29 = vector.broadcast %c0_i32_12 : i32 to vector<1x1x128xi32>
    %30 = arith.cmpi eq, %0, %29 : vector<1x1x128xi32>
    %31 = vector.shape_cast %28 : vector<16x16xf32> to vector<1x16x16xf32>
    %cst_13 = arith.constant dense<0.000000e+00> : vector<1xf32>
    %32 = vector.multi_reduction <add>, %31, %cst_13 [1, 2] : vector<1x16x16xf32> to vector<1xf32>
    %33 = vector.shape_cast %32 : vector<1xf32> to vector<1x1x1xf32>
    %34 = vector.extract %33[0, 0, 0] : f32 from vector<1x1x1xf32>
    %cst_14 = arith.constant 0.000000e+00 : f32
    %35 = vector.broadcast %34 : f32 to vector<1x1x128xf32>
    %36 = vector.broadcast %cst_14 : f32 to vector<1x1x128xf32>
    %37 = arith.select %30, %35, %36 : vector<1x1x128xi1>, vector<1x1x128xf32>
    %38 = arith.addf %1, %37 : vector<1x1x128xf32>
    %c0_15 = arith.constant 0 : index
    %c0_16 = arith.constant 0 : index
    %c0_17 = arith.constant 0 : index
    %c0_18 = arith.constant 0 : index
    %39 = vector.load %arg5[%c0_15, %c0_16, %c0_17, %c0_18] : memref<1x2x8x8xf32, #tpu.memory_space<vmem>>, vector<1x2x8x8xf32>
    %40 = vector.shape_cast %39 : vector<1x2x8x8xf32> to vector<2x8x8xf32>
    %c0_19 = arith.constant 0 : index
    %c0_20 = arith.constant 0 : index
    %41 = vector.load %arg6[%c0_19, %c0_20] : memref<16x8xf32, #tpu.memory_space<vmem>>, vector<16x8xf32>
    %c0_21 = arith.constant 0 : index
    %c0_22 = arith.constant 0 : index
    %42 = vector.load %arg7[%c0_21, %c0_22] : memref<8x16xf32, #tpu.memory_space<vmem>>, vector<8x16xf32>
    %43 = vector.extract_strided_slice %40 {offsets = [0, 0, 0], sizes = [1, 8, 8], strides = [1, 1, 1]} : vector<2x8x8xf32> to vector<1x8x8xf32>
    %44 = vector.shape_cast %43 : vector<1x8x8xf32> to vector<8x8xf32>
    %cst_23 = arith.constant dense<0.000000e+00> : vector<16x8xf32>
    %45 = tpu.matmul %41, %44, %cst_23 {dimension_numbers = #tpu.dot_dimension_numbers<[1], [0], [0], [1], [0, 0, 1, 1], [], []>} : vector<16x8xf32>, vector<8x8xf32>, vector<16x8xf32> -> vector<16x8xf32>
    %46 = vector.extract_strided_slice %40 {offsets = [1, 0, 0], sizes = [1, 8, 8], strides = [1, 1, 1]} : vector<2x8x8xf32> to vector<1x8x8xf32>
    %47 = vector.shape_cast %46 : vector<1x8x8xf32> to vector<8x8xf32>
    %cst_24 = arith.constant dense<0.000000e+00> : vector<16x8xf32>
    %48 = tpu.matmul %41, %47, %cst_24 {dimension_numbers = #tpu.dot_dimension_numbers<[1], [0], [0], [1], [0, 0, 1, 1], [], []>} : vector<16x8xf32>, vector<8x8xf32>, vector<16x8xf32> -> vector<16x8xf32>
    %49 = tpu.concatenate %45, %48 in 0 : vector<16x8xf32>, vector<16x8xf32> -> vector<32x8xf32>
    %cst_25 = arith.constant dense<0.000000e+00> : vector<32x16xf32>
    %50 = tpu.matmul %49, %42, %cst_25 {dimension_numbers = #tpu.dot_dimension_numbers<[1], [0], [0], [1], [0, 0, 1, 1], [], []>} : vector<32x8xf32>, vector<8x16xf32>, vector<32x16xf32> -> vector<32x16xf32>
    %51 = vector.extract_strided_slice %50 {offsets = [0, 0], sizes = [16, 16], strides = [1, 1]} : vector<32x16xf32> to vector<16x16xf32>
    %cst_26 = arith.constant 2.000000e+00 : f32
    %52 = vector.broadcast %cst_26 : f32 to vector<16x16xf32>
    %53 = arith.mulf %51, %52 : vector<16x16xf32>
    %54 = vector.extract_strided_slice %50 {offsets = [16, 0], sizes = [16, 16], strides = [1, 1]} : vector<32x16xf32> to vector<16x16xf32>
    %cst_27 = arith.constant 2.000000e+00 : f32
    %55 = vector.broadcast %cst_27 : f32 to vector<16x16xf32>
    %56 = arith.mulf %54, %55 : vector<16x16xf32>
    %57 = arith.subf %53, %8 : vector<16x16xf32>
    %58 = arith.subf %56, %10 : vector<16x16xf32>
    %59 = math.absf %57 : vector<16x16xf32>
    %60 = math.absf %58 : vector<16x16xf32>
    %61 = arith.addf %59, %60 : vector<16x16xf32>
    %cst_28 = arith.constant 0.000000e+00 : f32
    %62 = vector.broadcast %cst_28 : f32 to vector<16x16xf32>
    %63 = arith.select %15, %61, %62 : vector<16x16xi1>, vector<16x16xf32>
    %c1_i32 = arith.constant 1 : i32
    %64 = vector.broadcast %c1_i32 : i32 to vector<1x1x128xi32>
    %65 = arith.cmpi eq, %0, %64 : vector<1x1x128xi32>
    %66 = vector.shape_cast %63 : vector<16x16xf32> to vector<1x16x16xf32>
    %cst_29 = arith.constant dense<0.000000e+00> : vector<1xf32>
    %67 = vector.multi_reduction <add>, %66, %cst_29 [1, 2] : vector<1x16x16xf32> to vector<1xf32>
    %68 = vector.shape_cast %67 : vector<1xf32> to vector<1x1x1xf32>
    %69 = vector.extract %68[0, 0, 0] : f32 from vector<1x1x1xf32>
    %cst_30 = arith.constant 0.000000e+00 : f32
    %70 = vector.broadcast %69 : f32 to vector<1x1x128xf32>
    %71 = vector.broadcast %cst_30 : f32 to vector<1x1x128xf32>
    %72 = arith.select %65, %70, %71 : vector<1x1x128xi1>, vector<1x1x128xf32>
    %73 = arith.addf %38, %72 : vector<1x1x128xf32>
    %c0_31 = arith.constant 0 : index
    %c0_32 = arith.constant 0 : index
    %c0_33 = arith.constant 0 : index
    %c0_34 = arith.constant 0 : index
    %74 = vector.load %arg8[%c0_31, %c0_32, %c0_33, %c0_34] : memref<1x2x4x4xf32, #tpu.memory_space<vmem>>, vector<1x2x4x4xf32>
    %75 = vector.shape_cast %74 : vector<1x2x4x4xf32> to vector<2x4x4xf32>
    %c0_35 = arith.constant 0 : index
    %c0_36 = arith.constant 0 : index
    %76 = vector.load %arg9[%c0_35, %c0_36] : memref<16x4xf32, #tpu.memory_space<vmem>>, vector<16x4xf32>
    %c0_37 = arith.constant 0 : index
    %c0_38 = arith.constant 0 : index
    %77 = vector.load %arg10[%c0_37, %c0_38] : memref<4x16xf32, #tpu.memory_space<vmem>>, vector<4x16xf32>
    %78 = vector.extract_strided_slice %75 {offsets = [0, 0, 0], sizes = [1, 4, 4], strides = [1, 1, 1]} : vector<2x4x4xf32> to vector<1x4x4xf32>
    %79 = vector.shape_cast %78 : vector<1x4x4xf32> to vector<4x4xf32>
    %cst_39 = arith.constant dense<0.000000e+00> : vector<16x4xf32>
    %80 = tpu.matmul %76, %79, %cst_39 {dimension_numbers = #tpu.dot_dimension_numbers<[1], [0], [0], [1], [0, 0, 1, 1], [], []>} : vector<16x4xf32>, vector<4x4xf32>, vector<16x4xf32> -> vector<16x4xf32>
    %81 = vector.extract_strided_slice %75 {offsets = [1, 0, 0], sizes = [1, 4, 4], strides = [1, 1, 1]} : vector<2x4x4xf32> to vector<1x4x4xf32>
    %82 = vector.shape_cast %81 : vector<1x4x4xf32> to vector<4x4xf32>
    %cst_40 = arith.constant dense<0.000000e+00> : vector<16x4xf32>
    %83 = tpu.matmul %76, %82, %cst_40 {dimension_numbers = #tpu.dot_dimension_numbers<[1], [0], [0], [1], [0, 0, 1, 1], [], []>} : vector<16x4xf32>, vector<4x4xf32>, vector<16x4xf32> -> vector<16x4xf32>
    %84 = tpu.concatenate %80, %83 in 0 : vector<16x4xf32>, vector<16x4xf32> -> vector<32x4xf32>
    %cst_41 = arith.constant dense<0.000000e+00> : vector<32x16xf32>
    %85 = tpu.matmul %84, %77, %cst_41 {dimension_numbers = #tpu.dot_dimension_numbers<[1], [0], [0], [1], [0, 0, 1, 1], [], []>} : vector<32x4xf32>, vector<4x16xf32>, vector<32x16xf32> -> vector<32x16xf32>
    %86 = vector.extract_strided_slice %85 {offsets = [0, 0], sizes = [16, 16], strides = [1, 1]} : vector<32x16xf32> to vector<16x16xf32>
    %cst_42 = arith.constant 4.000000e+00 : f32
    %87 = vector.broadcast %cst_42 : f32 to vector<16x16xf32>
    %88 = arith.mulf %86, %87 : vector<16x16xf32>
    %89 = vector.extract_strided_slice %85 {offsets = [16, 0], sizes = [16, 16], strides = [1, 1]} : vector<32x16xf32> to vector<16x16xf32>
    %cst_43 = arith.constant 4.000000e+00 : f32
    %90 = vector.broadcast %cst_43 : f32 to vector<16x16xf32>
    %91 = arith.mulf %89, %90 : vector<16x16xf32>
    %92 = arith.subf %88, %8 : vector<16x16xf32>
    %93 = arith.subf %91, %10 : vector<16x16xf32>
    %94 = math.absf %92 : vector<16x16xf32>
    %95 = math.absf %93 : vector<16x16xf32>
    %96 = arith.addf %94, %95 : vector<16x16xf32>
    %cst_44 = arith.constant 0.000000e+00 : f32
    %97 = vector.broadcast %cst_44 : f32 to vector<16x16xf32>
    %98 = arith.select %15, %96, %97 : vector<16x16xi1>, vector<16x16xf32>
    %c2_i32 = arith.constant 2 : i32
    %99 = vector.broadcast %c2_i32 : i32 to vector<1x1x128xi32>
    %100 = arith.cmpi eq, %0, %99 : vector<1x1x128xi32>
    %101 = vector.shape_cast %98 : vector<16x16xf32> to vector<1x16x16xf32>
    %cst_45 = arith.constant dense<0.000000e+00> : vector<1xf32>
    %102 = vector.multi_reduction <add>, %101, %cst_45 [1, 2] : vector<1x16x16xf32> to vector<1xf32>
    %103 = vector.shape_cast %102 : vector<1xf32> to vector<1x1x1xf32>
    %104 = vector.extract %103[0, 0, 0] : f32 from vector<1x1x1xf32>
    %cst_46 = arith.constant 0.000000e+00 : f32
    %105 = vector.broadcast %104 : f32 to vector<1x1x128xf32>
    %106 = vector.broadcast %cst_46 : f32 to vector<1x1x128xf32>
    %107 = arith.select %100, %105, %106 : vector<1x1x128xi1>, vector<1x1x128xf32>
    %108 = arith.addf %73, %107 : vector<1x1x128xf32>
    %c0_47 = arith.constant 0 : index
    %c0_48 = arith.constant 0 : index
    %c0_49 = arith.constant 0 : index
    %109 = vector.load %arg11[%c0_47, %c0_48, %c0_49] : memref<1x1x128xf32, #tpu.memory_space<vmem>>, vector<1x1x128xf32>
    tpu.vector_store %arg11[%c0_47, %c0_48, %c0_49], %108 {strides = array<i32>} : memref<1x1x128xf32, #tpu.memory_space<vmem>>, vector<1x1x128xf32>,
    return
  }
  func.func @transform_0(%arg0: i32, %arg1: i32) -> (i32, i32, i32, i32) {
    %c0_i32 = arith.constant 0 : i32
    %c0_i32_0 = arith.constant 0 : i32
    %c0_i32_1 = arith.constant 0 : i32
    return %arg0, %c0_i32, %arg1, %c0_i32_0 : i32, i32, i32, i32
  }
  func.func @transform_1(%arg0: i32, %arg1: i32) -> (i32, i32, i32) {
    %c0_i32 = arith.constant 0 : i32
    %c0_i32_0 = arith.constant 0 : i32
    return %arg0, %arg1, %c0_i32 : i32, i32, i32
  }
  func.func @transform_2(%arg0: i32, %arg1: i32) -> (i32, i32, i32, i32) {
    %c0_i32 = arith.constant 0 : i32
    %c0_i32_0 = arith.constant 0 : i32
    %c0_i32_1 = arith.constant 0 : i32
    return %arg0, %c0_i32, %arg1, %c0_i32_0 : i32, i32, i32, i32
  }
  func.func @transform_3(%arg0: i32, %arg1: i32) -> (i32, i32, i32, i32) {
    %c0_i32 = arith.constant 0 : i32
    %c0_i32_0 = arith.constant 0 : i32
    %c0_i32_1 = arith.constant 0 : i32
    %c0_i32_2 = arith.constant 0 : i32
    return %arg0, %c0_i32, %c0_i32_0, %c0_i32_1 : i32, i32, i32, i32
  }
  func.func @transform_4(%arg0: i32, %arg1: i32) -> (i32, i32) {
    %c0_i32 = arith.constant 0 : i32
    %c0_i32_0 = arith.constant 0 : i32
    return %arg1, %c0_i32 : i32, i32
  }
  func.func @transform_5(%arg0: i32, %arg1: i32) -> (i32, i32) {
    %c0_i32 = arith.constant 0 : i32
    %c0_i32_0 = arith.constant 0 : i32
    %c0_i32_1 = arith.constant 0 : i32
    return %c0_i32, %c0_i32_0 : i32, i32
  }
  func.func @transform_6(%arg0: i32, %arg1: i32) -> (i32, i32, i32, i32) {
    %c0_i32 = arith.constant 0 : i32
    %c0_i32_0 = arith.constant 0 : i32
    %c0_i32_1 = arith.constant 0 : i32
    %c0_i32_2 = arith.constant 0 : i32
    return %arg0, %c0_i32, %c0_i32_0, %c0_i32_1 : i32, i32, i32, i32
  }
  func.func @transform_7(%arg0: i32, %arg1: i32) -> (i32, i32) {
    %c0_i32 = arith.constant 0 : i32
    %c0_i32_0 = arith.constant 0 : i32
    return %arg1, %c0_i32 : i32, i32
  }
  func.func @transform_8(%arg0: i32, %arg1: i32) -> (i32, i32) {
    %c0_i32 = arith.constant 0 : i32
    %c0_i32_0 = arith.constant 0 : i32
    %c0_i32_1 = arith.constant 0 : i32
    return %c0_i32, %c0_i32_0 : i32, i32
  }
  func.func @transform_9(%arg0: i32, %arg1: i32) -> (i32, i32, i32) {
    %c1_i32 = arith.constant 1 : i32
    %0 = arith.muli %arg0, %c1_i32 : i32
    %1 = arith.addi %0, %arg1 : i32
    %c0_i32 = arith.constant 0 : i32
    %c0_i32_0 = arith.constant 0 : i32
    %c0_i32_1 = arith.constant 0 : i32
    return %1, %c0_i32, %c0_i32_0 : i32, i32, i32
  }
}

module attributes {stable_mosaic.version = 11 : i64} {
  func.func @kernel(%arg0: i32, %arg1: i32, %arg2: memref<1x2x16x16xf32, #tpu.memory_space<vmem>>, %arg3: memref<1x16x16xi8, #tpu.memory_space<vmem>>, %arg4: memref<1x2x16x16xf32, #tpu.memory_space<vmem>>, %arg5: memref<1x2x8x8xf32, #tpu.memory_space<vmem>>, %arg6: memref<16x8xf32, #tpu.memory_space<vmem>>, %arg7: memref<8x16xf32, #tpu.memory_space<vmem>>, %arg8: memref<1x2x4x4xf32, #tpu.memory_space<vmem>>, %arg9: memref<16x4xf32, #tpu.memory_space<vmem>>, %arg10: memref<4x16xf32, #tpu.memory_space<vmem>>, %arg11: memref<1x1x128xf32, #tpu.memory_space<vmem>>) attributes {dimension_semantics = [#tpu.dimension_semantics<parallel>, #tpu.dimension_semantics<parallel>], iteration_bounds = array<i64: 2, 1>, scalar_prefetch = 0 : i64, scratch_operands = 0 : i64, tpu.core_type = #tpu.core_type<tc>, window_params = [{transform_indices = @transform_0, window_bounds = array<i64: 1, 2, 16, 16>}, {transform_indices = @transform_1, window_bounds = array<i64: 1, 16, 16>}, {transform_indices = @transform_2, window_bounds = array<i64: 1, 2, 16, 16>}, {transform_indices = @transform_3, window_bounds = array<i64: 1, 2, 8, 8>}, {transform_indices = @transform_4, window_bounds = array<i64: 16, 8>}, {pipeline_mode = #tpu.pipeline_mode<synchronous>, transform_indices = @transform_5, window_bounds = array<i64: 8, 16>}, {transform_indices = @transform_6, window_bounds = array<i64: 1, 2, 4, 4>}, {transform_indices = @transform_7, window_bounds = array<i64: 16, 4>}, {pipeline_mode = #tpu.pipeline_mode<synchronous>, transform_indices = @transform_8, window_bounds = array<i64: 4, 16>}, {transform_indices = @transform_9, window_bounds = array<i64: 1, 1, 128>}]} {
    %0 = tpu.iota {dimensions = array<i32: 2>} : vector<1x1x128xi32>
    %cst = arith.constant 0.000000e+00 : f32
    %1 = vector.broadcast %cst : f32 to vector<1x1x128xf32>
    %c0 = arith.constant 0 : index
    %c0_0 = arith.constant 0 : index
    %c0_1 = arith.constant 0 : index
    %c0_2 = arith.constant 0 : index
    %2 = vector.load %arg2[%c0, %c0_0, %c0_1, %c0_2] : memref<1x2x16x16xf32, #tpu.memory_space<vmem>>, vector<1x2x16x16xf32>
    %3 = vector.shape_cast %2 : vector<1x2x16x16xf32> to vector<2x16x16xf32>
    %4 = arith.cmpf one, %3, %3 : vector<2x16x16xf32>
    %cst_3 = arith.constant 0.000000e+00 : f32
    %5 = vector.broadcast %cst_3 : f32 to vector<2x16x16xf32>
    %6 = arith.select %4, %5, %3 : vector<2x16x16xi1>, vector<2x16x16xf32>
    %7 = vector.extract_strided_slice %6 {offsets = [0, 0, 0], sizes = [1, 16, 16], strides = [1, 1, 1]} : vector<2x16x16xf32> to vector<1x16x16xf32>
    %8 = vector.shape_cast %7 : vector<1x16x16xf32> to vector<16x16xf32>
    %9 = vector.extract_strided_slice %6 {offsets = [1, 0, 0], sizes = [1, 16, 16], strides = [1, 1, 1]} : vector<2x16x16xf32> to vector<1x16x16xf32>
    %10 = vector.shape_cast %9 : vector<1x16x16xf32> to vector<16x16xf32>
    %c0_4 = arith.constant 0 : index
    %c0_5 = arith.constant 0 : index
    %c0_6 = arith.constant 0 : index
    %11 = vector.load %arg3[%c0_4, %c0_5, %c0_6] : memref<1x16x16xi8, #tpu.memory_space<vmem>>, vector<1x16x16xi8>
    %12 = vector.shape_cast %11 : vector<1x16x16xi8> to vector<16x16xi8>
    %13 = arith.extsi %12 : vector<16x16xi8> to vector<16x16xi32>
    %c0_i32 = arith.constant 0 : i32
    %14 = vector.broadcast %c0_i32 : i32 to vector<16x16xi32>
    %15 = arith.cmpi ne, %13, %14 : vector<16x16xi32>
    %c0_7 = arith.constant 0 : index
    %c0_8 = arith.constant 0 : index
    %c0_9 = arith.constant 0 : index
    %c0_10 = arith.constant 0 : index
    %16 = vector.load %arg4[%c0_7, %c0_8, %c0_9, %c0_10] : memref<1x2x16x16xf32, #tpu.memory_space<vmem>>, vector<1x2x16x16xf32>
    %17 = vector.shape_cast %16 : vector<1x2x16x16xf32> to vector<2x16x16xf32>
    %18 = vector.extract_strided_slice %17 {offsets = [0, 0, 0], sizes = [1, 16, 16], strides = [1, 1, 1]} : vector<2x16x16xf32> to vector<1x16x16xf32>
    %19 = vector.shape_cast %18 : vector<1x16x16xf32> to vector<16x16xf32>
    %20 = vector.extract_strided_slice %17 {offsets = [1, 0, 0], sizes = [1, 16, 16], strides = [1, 1, 1]} : vector<2x16x16xf32> to vector<1x16x16xf32>
    %21 = vector.shape_cast %20 : vector<1x16x16xf32> to vector<16x16xf32>
    %22 = arith.subf %19, %8 : vector<16x16xf32>
    %23 = arith.subf %21, %10 : vector<16x16xf32>
    %24 = math.absf %22 : vector<16x16xf32>
    %25 = math.absf %23 : vector<16x16xf32>
    %26 = arith.addf %24, %25 : vector<16x16xf32>
    %cst_11 = arith.constant 0.000000e+00 : f32
    %27 = vector.broadcast %cst_11 : f32 to vector<16x16xf32>
    %28 = arith.select %15, %26, %27 : vector<16x16xi1>, vector<16x16xf32>
    %c0_i32_12 = arith.constant 0 : i32
    %29 = vector.broadcast %c0_i32_12 : i32 to vector<1x1x128xi32>
    %30 = arith.cmpi eq, %0, %29 : vector<1x1x128xi32>
    %31 = vector.shape_cast %28 : vector<16x16xf32> to vector<1x16x16xf32>
    %cst_13 = arith.constant dense<0.000000e+00> : vector<1xf32>
    %32 = vector.multi_reduction <add>, %31, %cst_13 [1, 2] : vector<1x16x16xf32> to vector<1xf32>
    %33 = vector.shape_cast %32 : vector<1xf32> to vector<1x1x1xf32>
    %34 = vector.extract %33[0, 0, 0] : f32 from vector<1x1x1xf32>
    %cst_14 = arith.constant 0.000000e+00 : f32
    %35 = vector.broadcast %34 : f32 to vector<1x1x128xf32>
    %36 = vector.broadcast %cst_14 : f32 to vector<1x1x128xf32>
    %37 = arith.select %30, %35, %36 : vector<1x1x128xi1>, vector<1x1x128xf32>
    %38 = arith.addf %1, %37 : vector<1x1x128xf32>
    %c0_15 = arith.constant 0 : index
    %c0_16 = arith.constant 0 : index
    %c0_17 = arith.constant 0 : index
    %c0_18 = arith.constant 0 : index
    %39 = vector.load %arg5[%c0_15, %c0_16, %c0_17, %c0_18] : memref<1x2x8x8xf32, #tpu.memory_space<vmem>>, vector<1x2x8x8xf32>
    %40 = vector.shape_cast %39 : vector<1x2x8x8xf32> to vector<2x8x8xf32>
    %c0_19 = arith.constant 0 : index
    %c0_20 = arith.constant 0 : index
    %41 = vector.load %arg6[%c0_19, %c0_20] : memref<16x8xf32, #tpu.memory_space<vmem>>, vector<16x8xf32>
    %c0_21 = arith.constant 0 : index
    %c0_22 = arith.constant 0 : index
    %42 = vector.load %arg7[%c0_21, %c0_22] : memref<8x16xf32, #tpu.memory_space<vmem>>, vector<8x16xf32>
    %43 = vector.extract_strided_slice %40 {offsets = [0, 0, 0], sizes = [1, 8, 8], strides = [1, 1, 1]} : vector<2x8x8xf32> to vector<1x8x8xf32>
    %44 = vector.shape_cast %43 : vector<1x8x8xf32> to vector<8x8xf32>
    %cst_23 = arith.constant dense<0.000000e+00> : vector<16x8xf32>
    %45 = tpu.matmul %41, %44, %cst_23 {dimension_numbers = #tpu.dot_dimension_numbers<[1], [0], [0], [1], [0, 0, 1, 1], [], []>} : vector<16x8xf32>, vector<8x8xf32>, vector<16x8xf32> -> vector<16x8xf32>
    %46 = vector.extract_strided_slice %40 {offsets = [1, 0, 0], sizes = [1, 8, 8], strides = [1, 1, 1]} : vector<2x8x8xf32> to vector<1x8x8xf32>
    %47 = vector.shape_cast %46 : vector<1x8x8xf32> to vector<8x8xf32>
    %cst_24 = arith.constant dense<0.000000e+00> : vector<16x8xf32>
    %48 = tpu.matmul %41, %47, %cst_24 {dimension_numbers = #tpu.dot_dimension_numbers<[1], [0], [0], [1], [0, 0, 1, 1], [], []>} : vector<16x8xf32>, vector<8x8xf32>, vector<16x8xf32> -> vector<16x8xf32>
    %49 = tpu.concatenate %45, %48 in 0 : vector<16x8xf32>, vector<16x8xf32> -> vector<32x8xf32>
    %cst_25 = arith.constant dense<0.000000e+00> : vector<32x16xf32>
    %50 = tpu.matmul %49, %42, %cst_25 {dimension_numbers = #tpu.dot_dimension_numbers<[1], [0], [0], [1], [0, 0, 1, 1], [], []>} : vector<32x8xf32>, vector<8x16xf32>, vector<32x16xf32> -> vector<32x16xf32>
    %51 = vector.extract_strided_slice %50 {offsets = [0, 0], sizes = [16, 16], strides = [1, 1]} : vector<32x16xf32> to vector<16x16xf32>
    %cst_26 = arith.constant 2.000000e+00 : f32
    %52 = vector.broadcast %cst_26 : f32 to vector<16x16xf32>
    %53 = arith.mulf %51, %52 : vector<16x16xf32>
    %54 = vector.extract_strided_slice %50 {offsets = [16, 0], sizes = [16, 16], strides = [1, 1]} : vector<32x16xf32> to vector<16x16xf32>
    %cst_27 = arith.constant 2.000000e+00 : f32
    %55 = vector.broadcast %cst_27 : f32 to vector<16x16xf32>
    %56 = arith.mulf %54, %55 : vector<16x16xf32>
    %57 = arith.subf %53, %8 : vector<16x16xf32>
    %58 = arith.subf %56, %10 : vector<16x16xf32>
    %59 = math.absf %57 : vector<16x16xf32>
    %60 = math.absf %58 : vector<16x16xf32>
    %61 = arith.addf %59, %60 : vector<16x16xf32>
    %cst_28 = arith.constant 0.000000e+00 : f32
    %62 = vector.broadcast %cst_28 : f32 to vector<16x16xf32>
    %63 = arith.select %15, %61, %62 : vector<16x16xi1>, vector<16x16xf32>
    %c1_i32 = arith.constant 1 : i32
    %64 = vector.broadcast %c1_i32 : i32 to vector<1x1x128xi32>
    %65 = arith.cmpi eq, %0, %64 : vector<1x1x128xi32>
    %66 = vector.shape_cast %63 : vector<16x16xf32> to vector<1x16x16xf32>
    %cst_29 = arith.constant dense<0.000000e+00> : vector<1xf32>
    %67 = vector.multi_reduction <add>, %66, %cst_29 [1, 2] : vector<1x16x16xf32> to vector<1xf32>
    %68 = vector.shape_cast %67 : vector<1xf32> to vector<1x1x1xf32>
    %69 = vector.extract %68[0, 0, 0] : f32 from vector<1x1x1xf32>
    %cst_30 = arith.constant 0.000000e+00 : f32
    %70 = vector.broadcast %69 : f32 to vector<1x1x128xf32>
    %71 = vector.broadcast %cst_30 : f32 to vector<1x1x128xf32>
    %72 = arith.select %65, %70, %71 : vector<1x1x128xi1>, vector<1x1x128xf32>
    %73 = arith.addf %38, %72 : vector<1x1x128xf32>
    %c0_31 = arith.constant 0 : index
    %c0_32 = arith.constant 0 : index
    %c0_33 = arith.constant 0 : index
    %c0_34 = arith.constant 0 : index
    %74 = vector.load %arg8[%c0_31, %c0_32, %c0_33, %c0_34] : memref<1x2x4x4xf32, #tpu.memory_space<vmem>>, vector<1x2x4x4xf32>
    %75 = vector.shape_cast %74 : vector<1x2x4x4xf32> to vector<2x4x4xf32>
    %c0_35 = arith.constant 0 : index
    %c0_36 = arith.constant 0 : index
    %76 = vector.load %arg9[%c0_35, %c0_36] : memref<16x4xf32, #tpu.memory_space<vmem>>, vector<16x4xf32>
    %c0_37 = arith.constant 0 : index
    %c0_38 = arith.constant 0 : index
    %77 = vector.load %arg10[%c0_37, %c0_38] : memref<4x16xf32, #tpu.memory_space<vmem>>, vector<4x16xf32>
    %78 = vector.extract_strided_slice %75 {offsets = [0, 0, 0], sizes = [1, 4, 4], strides = [1, 1, 1]} : vector<2x4x4xf32> to vector<1x4x4xf32>
    %79 = vector.shape_cast %78 : vector<1x4x4xf32> to vector<4x4xf32>
    %cst_39 = arith.constant dense<0.000000e+00> : vector<16x4xf32>
    %80 = tpu.matmul %76, %79, %cst_39 {dimension_numbers = #tpu.dot_dimension_numbers<[1], [0], [0], [1], [0, 0, 1, 1], [], []>} : vector<16x4xf32>, vector<4x4xf32>, vector<16x4xf32> -> vector<16x4xf32>
    %81 = vector.extract_strided_slice %75 {offsets = [1, 0, 0], sizes = [1, 4, 4], strides = [1, 1, 1]} : vector<2x4x4xf32> to vector<1x4x4xf32>
    %82 = vector.shape_cast %81 : vector<1x4x4xf32> to vector<4x4xf32>
    %cst_40 = arith.constant dense<0.000000e+00> : vector<16x4xf32>
    %83 = tpu.matmul %76, %82, %cst_40 {dimension_numbers = #tpu.dot_dimension_numbers<[1], [0], [0], [1], [0, 0, 1, 1], [], []>} : vector<16x4xf32>, vector<4x4xf32>, vector<16x4xf32> -> vector<16x4xf32>
    %84 = tpu.concatenate %80, %83 in 0 : vector<16x4xf32>, vector<16x4xf32> -> vector<32x4xf32>
    %cst_41 = arith.constant dense<0.000000e+00> : vector<32x16xf32>
    %85 = tpu.matmul %84, %77, %cst_41 {dimension_numbers = #tpu.dot_dimension_numbers<[1], [0], [0], [1], [0, 0, 1, 1], [], []>} : vector<32x4xf32>, vector<4x16xf32>, vector<32x16xf32> -> vector<32x16xf32>
    %86 = vector.extract_strided_slice %85 {offsets = [0, 0], sizes = [16, 16], strides = [1, 1]} : vector<32x16xf32> to vector<16x16xf32>
    %cst_42 = arith.constant 4.000000e+00 : f32
    %87 = vector.broadcast %cst_42 : f32 to vector<16x16xf32>
    %88 = arith.mulf %86, %87 : vector<16x16xf32>
    %89 = vector.extract_strided_slice %85 {offsets = [16, 0], sizes = [16, 16], strides = [1, 1]} : vector<32x16xf32> to vector<16x16xf32>
    %cst_43 = arith.constant 4.000000e+00 : f32
    %90 = vector.broadcast %cst_43 : f32 to vector<16x16xf32>
    %91 = arith.mulf %89, %90 : vector<16x16xf32>
    %92 = arith.subf %88, %8 : vector<16x16xf32>
    %93 = arith.subf %91, %10 : vector<16x16xf32>
    %94 = math.absf %92 : vector<16x16xf32>
    %95 = math.absf %93 : vector<16x16xf32>
    %96 = arith.addf %94, %95 : vector<16x16xf32>
    %cst_44 = arith.constant 0.000000e+00 : f32
    %97 = vector.broadcast %cst_44 : f32 to vector<16x16xf32>
    %98 = arith.select %15, %96, %97 : vector<16x16xi1>, vector<16x16xf32>
    %c2_i32 = arith.constant 2 : i32
    %99 = vector.broadcast %c2_i32 : i32 to vector<1x1x128xi32>
    %100 = arith.cmpi eq, %0, %99 : vector<1x1x128xi32>
    %101 = vector.shape_cast %98 : vector<16x16xf32> to vector<1x16x16xf32>
    %cst_45 = arith.constant dense<0.000000e+00> : vector<1xf32>
    %102 = vector.multi_reduction <add>, %101, %cst_45 [1, 2] : vector<1x16x16xf32> to vector<1xf32>
    %103 = vector.shape_cast %102 : vector<1xf32> to vector<1x1x1xf32>
    %104 = vector.extract %103[0, 0, 0] : f32 from vector<1x1x1xf32>
    %cst_46 = arith.constant 0.000000e+00 : f32
    %105 = vector.broadcast %104 : f32 to vector<1x1x128xf32>
    %106 = vector.broadcast %cst_46 : f32 to vector<1x1x128xf32>
    %107 = arith.select %100, %105, %106 : vector<1x1x128xi1>, vector<1x1x128xf32>
    %108 = arith.addf %73, %107 : vector<1x1x128xf32>
    %c0_47 = arith.constant 0 : index
    %c0_48 = arith.constant 0 : index
    %c0_49 = arith.constant 0 : index
    %109 = vector.load %arg11[%c0_47, %c0_48, %c0_49] : memref<1x1x128xf32, #tpu.memory_space<vmem>>, vector<1x1x128xf32>
    tpu.vector_store %arg11[%c0_47, %c0_48, %c0_49], %108 {strides = array<i32>} : memref<1x1x128xf32, #tpu.memory_space<vmem>>, vector<1x1x128xf32>,
    return
  }
  func.func @transform_0(%arg0: i32, %arg1: i32) -> (i32, i32, i32, i32) {
    %c0_i32 = arith.constant 0 : i32
    %c0_i32_0 = arith.constant 0 : i32
    %c0_i32_1 = arith.constant 0 : i32
    return %arg0, %c0_i32, %arg1, %c0_i32_0 : i32, i32, i32, i32
  }
  func.func @transform_1(%arg0: i32, %arg1: i32) -> (i32, i32, i32) {
    %c0_i32 = arith.constant 0 : i32
    %c0_i32_0 = arith.constant 0 : i32
    return %arg0, %arg1, %c0_i32 : i32, i32, i32
  }
  func.func @transform_2(%arg0: i32, %arg1: i32) -> (i32, i32, i32, i32) {
    %c0_i32 = arith.constant 0 : i32
    %c0_i32_0 = arith.constant 0 : i32
    %c0_i32_1 = arith.constant 0 : i32
    return %arg0, %c0_i32, %arg1, %c0_i32_0 : i32, i32, i32, i32
  }
  func.func @transform_3(%arg0: i32, %arg1: i32) -> (i32, i32, i32, i32) {
    %c0_i32 = arith.constant 0 : i32
    %c0_i32_0 = arith.constant 0 : i32
    %c0_i32_1 = arith.constant 0 : i32
    %c0_i32_2 = arith.constant 0 : i32
    return %arg0, %c0_i32, %c0_i32_0, %c0_i32_1 : i32, i32, i32, i32
  }
  func.func @transform_4(%arg0: i32, %arg1: i32) -> (i32, i32) {
    %c0_i32 = arith.constant 0 : i32
    %c0_i32_0 = arith.constant 0 : i32
    return %arg1, %c0_i32 : i32, i32
  }
  func.func @transform_5(%arg0: i32, %arg1: i32) -> (i32, i32) {
    %c0_i32 = arith.constant 0 : i32
    %c0_i32_0 = arith.constant 0 : i32
    %c0_i32_1 = arith.constant 0 : i32
    return %c0_i32, %c0_i32_0 : i32, i32
  }
  func.func @transform_6(%arg0: i32, %arg1: i32) -> (i32, i32, i32, i32) {
    %c0_i32 = arith.constant 0 : i32
    %c0_i32_0 = arith.constant 0 : i32
    %c0_i32_1 = arith.constant 0 : i32
    %c0_i32_2 = arith.constant 0 : i32
    return %arg0, %c0_i32, %c0_i32_0, %c0_i32_1 : i32, i32, i32, i32
  }
  func.func @transform_7(%arg0: i32, %arg1: i32) -> (i32, i32) {
    %c0_i32 = arith.constant 0 : i32
    %c0_i32_0 = arith.constant 0 : i32
    return %arg1, %c0_i32 : i32, i32
  }
  func.func @transform_8(%arg0: i32, %arg1: i32) -> (i32, i32) {
    %c0_i32 = arith.constant 0 : i32
    %c0_i32_0 = arith.constant 0 : i32
    %c0_i32_1 = arith.constant 0 : i32
    return %c0_i32, %c0_i32_0 : i32, i32
  }
  func.func @transform_9(%arg0: i32, %arg1: i32) -> (i32, i32, i32) {
    %c1_i32 = arith.constant 1 : i32
    %0 = arith.muli %arg0, %c1_i32 : i32
    %1 = arith.addi %0, %arg1 : i32
    %c0_i32 = arith.constant 0 : i32
    %c0_i32_0 = arith.constant 0 : i32
    %c0_i32_1 = arith.constant 0 : i32
    return %1, %c0_i32, %c0_i32_0 : i32, i32, i32
  }
}

</mosaic_0001>

<bundles_post_ra>
// kernel: tpu_custom_call.1
= control target key start
LH: loop header
LB: loop body
LE: loop exit
PB: predicated region body
PF: predicated region fallthrough
CT: control target
= control target key end

     0   :  { %s2287_s0 = inlined_call_operand.hbm [shape: f32[2,2,16,16], index: 0, kind: input, shape index: {}]   ;;  %s2288_s1 = inlined_call_operand.hbm [shape: s8[2,16,16], index: 1, kind: input, shape index: {}]   ;;  %s2289_s2 = inlined_call_operand.hbm [shape: f32[2,2,16,16], index: 2, kind: input, shape index: {}]   ;;  %s2290_s3 = inlined_call_operand.vmem [shape: f32[2,2,8,8], index: 3, kind: input, shape index: {}]   ;;  %s2291_s4 = inlined_call_operand.vmem [shape: f32[16,8], index: 4, kind: input, shape index: {}]   ;;  %s2292_s5 = inlined_call_operand.hbm [shape: f32[8,16], index: 5, kind: input, shape index: {}]   ;;  %s2293_s6 = inlined_call_operand.vmem [shape: f32[2,2,4,4], index: 6, kind: input, shape index: {}]   ;;  %s2294_s7 = inlined_call_operand.vmem [shape: f32[16,4], index: 7, kind: input, shape index: {}]   ;;  %s2295_s8 = inlined_call_operand.vmem [shape: f32[4,16], index: 8, kind: input, shape index: {}]   ;;  %s2296_s9 = inlined_call_operand.hbm [shape: f32[2,1,128], index: 9, kind: output, shape index: {}]  }
   0x1   :  { %2315 = sst [smem:[#allocation22_spill]] %s2288_s1 }
   0x2   :  { %2316 = sst [smem:[#allocation23_spill]] %s2295_s8 }
   0x3   :  { %2317 = sst [smem:[#allocation24_spill]] %s2296_s9 }
   0x4   :  { %14 = vsyncpa [#allocation3], 0 }
   0x5   :  { %16 = vsyncpa [#allocation3 + $0x1], 0 }
   0x6   :  { %17 = vsyncpa [#allocation6], 0 }
   0x7   :  { %19 = vsyncpa [#allocation6 + $0x1], 0 }
   0x8   :  { %20 = vsyncpa [#allocation9], 0 }
   0x9   :  { %21 = vsyncpa [#allocation4], 0 }
   0xa   :  { %23 = vsyncpa [#allocation4 + $0x1], 0  ;;  %s1881_s30 = smov 0   ;;  %s1883_s10 = smov 0  }
   0xb   :  { %s1885_s11 = smov 0   ;;  %s1887_s12 = smov 0  }
   0xc   :  { %s1889_s13 = smov 0   ;;  %s1891_s14 = smov 0  }
   0xd LB: > { %2318 = sst [smem:[#allocation15_spill]] %s1800_s30  ;;  %s41_s15 = sadd.s32 1, %s1816_s13  ;;  %s1820_s14 = sphi %s1891_s14, %s29_s14   ;;  %s1816_s13 = sphi %s1889_s13, %s2359_s13   ;;  %s1812_s12 = sphi %s1887_s12, %s2358_s12   ;;  %s1808_s11 = sphi %s1885_s11, %s2354_s11   ;;  %s1804_s10 = sphi %s1883_s10, %s2357_s10   ;;  %s1800_s30 = sphi %s1881_s30, %s2356_s30  }
   0xe   : > { %2319 = sst [smem:[#allocation16_spill]] %s1808_s11  ;;  %s50_s16 = sadd.s32 1, %s1808_s11 }
   0xf   : > { %2320 = sst [smem:[#allocation17_spill]] %s1820_s14  ;;  %p43_p0 = scmp.ge.s32.totalorder %s41_s15, 2 }
  0x10   : > { %p2297_p1 = scmp.ne.s32.totalorder %s1808_s11, %s1804_s10  ;;  %p58_p2 = scmp.eq.s32.totalorder %s1820_s14, 0 }
  0x11   : > { %s2361_s15 = smov (%p43_p0, %s41_s15), 0  ;;  %p1556_p5 = scmp.lt.s32.totalorder %s1820_s14, 2 }
  0x12   : > { %2321 = sst [smem:[#allocation18_spill]] %s2361_s15  ;;  %p59_p4 = por %p58_p2, %p2297_p1 }
  0x13   : > { %s45_s17 = ssub.s32 %s1816_s13, %s2361_s15  ;;  %s1926_s18 = sand.u32 1, %s1808_s11  }
  0x14   : > { %p48_p6 = scmp.eq.s32.totalorder %s45_s17, 0  ;;  %p1928_p7 = pnand %p1556_p5, %p59_p4 }
  0x15   : > { %s372_s20 = sand.u32 1, %s1820_s14   ;;  %s1415_s21 = sshll.u32 %s1926_s18, 2 }
  0x16   : > { %s2322_s19 = scalar_select %p1928_p7, 1, 0 }
  0x17   : > { %s1935_s22 = scalar_select %p48_p6, %s1808_s11, %s50_s16  }
  0x18   : > { %s1453_s23 = sshll.u32 %s1816_s13, 6  ;;  %s2324_s1 = sld [smem:[#allocation22_spill]] }
  0x19   : > { %2323 = sst [smem:[#allocation19_spill]] %s1935_s22  ;;  %s376_s27 = scalar_lea.vmem [#allocation5], %s1415_s21 }
  0x1a   : > { %s385_s28 = sshll.u32 %s376_s27, 4  ;;  %s1945_s29 = scalar_lea.sflag [#allocation6], %s372_s20  ;;  %s1943_s28 = int_to_ptr.vmem [resolvable:$true] %s385_s28 }
  0x1b   : > { %p1951_p9 = pneg %p1928_p7 }
  0x1d   : > { %s2325_s16 = scalar_select %p1951_p9, 1, 0 }
  0x1e   : > { %s1941_s26 = scalar_lea.hbm %s2324_s1, %s1453_s23  ;;  %s1617_s21 = scalar_lea.hbm %s2324_s1, 128 }
  0x1f   : > { %s1612_s17 = scalar_lea.hbm %s1941_s26, 64  ;;  %p1618_p12 = scmp.lt.u32.totalorder %s1941_s26, %s2324_s1 }
  0x20   : > { %p1613_p8 = scmp.ne.s32.totalorder %s1941_s26, %s1612_s17  ;;  %p1619_p13 = scmp.lt.u32.totalorder %s1617_s21, %s1612_s17 }
  0x21   : > { %p1621_p2 = scmp.lt.u32.totalorder %s1612_s17, %s1941_s26 }
  0x22   : > { %p1615_p10 = pnand %p1951_p9, %p1613_p8  ;;  %p1620_p0 = por %p1619_p13, %p1618_p12 }
  0x24   : > { %p1616_p11 = pneg %p1615_p10  ;;  %p1622_p4 = por %p1621_p2, %p1620_p0 }
  0x26   : > { %p1623_p5 = pnand %p1622_p4, %p1616_p11 }
  0x28   : > { %1626 = shalt.err (!%p1623_p5)
}
  0x29   : > { %s1627_s20 = scalar_lea.vmem %s1943_s28, 64  ;;  %s1822_s23 = smov [#allocation5]  }
  0x2a   : > { %p1628_p6 = scmp.ne.s32.totalorder %s1943_s28, %s1627_s20  ;;  %s1632_s24 = sshll.u32 %s1822_s23, 4  ;;  %s1633_s24 = int_to_ptr.vmem [resolvable:$false] %s1632_s24 }
  0x2b   : > { %s1634_s25 = scalar_lea.vmem %s1633_s24, 128  ;;  %p1635_p3 = scmp.lt.s32.totalorder %s1943_s28, %s1633_s24 }
  0x2c   : > { %p1630_p8 = pnand %p1628_p6, %p1951_p9  ;;  %p1636_p1 = scmp.lt.s32.totalorder %s1634_s25, %s1627_s20 }
  0x2e   : > { %p1631_p10 = pneg %p1630_p8  ;;  %p1637_p12 = por %p1636_p1, %p1635_p3 }
  0x30   : > { %p1638_p13 = pnand %p1637_p12, %p1631_p10 }
  0x32   : > { %1641 = shalt.err (!%p1638_p13)
}
  0x33   : > { %s1823_s17 = smov 32   ;;  %s1824_s21 = smov 2  }
  0x34   : > { %1547 = dma.hbm_to_vmem [thread:$0]  (!%p1928_p7), %s1941_s26, 64, %s1943_s28, %s1945_s29, %s1823_s17, %s1823_s17, %s1824_s21  }
  0x35   : > { %s1976_s27 = sadd.s32 4294967295, %s1820_s14   ;;  %s1406_s20 = sadd.s32 4294967294, %s1820_s14  }
  0x36   : > { %p63_p1 = scmp.ne.s32.totalorder %s1804_s10, %s1800_s30  ;;  %p2307_p3 = scmp.eq.s32.totalorder %s1976_s27, 0 }
  0x37   : > { %p291_p11 = scmp.eq.s32.totalorder %s1976_s27, 1  ;;  %p297_p0 = scmp.eq.s32.totalorder %s1406_s20, 1 }
  0x38   : > { %p1407_p2 = scmp.ge.s32.totalorder %s1820_s14, 1  ;;  %p1986_p4 = por %p2307_p3, %p63_p1 }
  0x39   : > { %p2327_p5 = scmp.ne.s32.totalorder %s1808_s11, %s1804_s10  ;;  %p1997_p8 = por %p297_p0, %p63_p1 }
  0x3a   : > { %s2326_s23 = scalar_select %p1986_p4, 1, 0 }
  0x3b   : > { %p1993_p6 = por %p291_p11, %p2327_p5  ;;  %p304_p10 = scmp.lt.s32.totalorder %s1820_s14, 3 }
  0x3c   : > { %s2330_s28 = scalar_select %p1997_p8, 1, 0 }
  0x3d   : > { %s2328_s26 = scalar_select %p1993_p6, 1, 0 }
  0x3e   : > { %2331 = sst [smem:[#allocation21_spill]] %s2330_s28  ;;  %p2002_p12 = pnand %p1407_p2, %p304_p10 }
  0x3f   : > { %2329 = sst [smem:[#allocation20_spill]] %s2328_s26  ;;  %s1825_s25 = smov [#allocation8]  }
  0x40   : > { %s2332_s24 = scalar_select %p2002_p12, 1, 0 }
  0x41   : > { %s326_s17 = sshll.u32 %s1825_s25, 4  ;;  %p1537_p13 = pneg %p2002_p12  ;;  %s327_s17 = int_to_ptr.vmem [resolvable:$true] %s326_s17 }
  0x42   : > { %s1412_s21 = sshll.u32 %s1926_s18, 5  ;;  %s1452_s20 = sshll.u32 %s1816_s13, 9 }
  0x43   : > { %p2012_p11 = pnand %p1537_p13, %p2307_p3  ;;  %s2021_s11 = scalar_lea.hbm %s2287_s0, %s1452_s20 }
  0x44   : > { %s353_s14 = scalar_lea.vmem [#allocation2], %s1412_s21  ;;  %s1642_s9 = scalar_lea.hbm %s2292_s5, 128 }
  0x45   : > { %s362_s25 = sshll.u32 %s353_s14, 4  ;;  %p1643_p1 = scmp.ne.s32.totalorder %s2292_s5, %s1642_s9  ;;  %s2025_s25 = int_to_ptr.vmem [resolvable:$true] %s362_s25 }
  0x46   : > { %p1644_p0 = pneg %p2012_p11  ;;  %p1649_p10 = scmp.lt.u32.totalorder %s1642_s9, %s2292_s5 }
  0x48   : > { %p1645_p2 = pnand %p1644_p0, %p1643_p1 }
  0x4a   : > { %p1646_p5 = pneg %p1645_p2 }
  0x4c   : > { %p1651_p13 = pnand %p1649_p10, %p1646_p5 }
  0x4e   : > { %1654 = shalt.err (!%p1651_p13)
}
  0x4f   : > { %s1655_s14 = scalar_lea.vmem %s327_s17, 128  ;;  %p1663_p4 = scmp.lt.s32.totalorder %s327_s17, %s327_s17 }
  0x50   : > { %p1656_p3 = scmp.ne.s32.totalorder %s327_s17, %s1655_s14  ;;  %p1664_p12 = scmp.lt.s32.totalorder %s1655_s14, %s1655_s14 }
  0x52   : > { %p1658_p8 = pnand %p1656_p3, %p1644_p0  ;;  %p1665_p7 = por %p1664_p12, %p1663_p4 }
  0x54   : > { %p1659_p6 = pneg %p1658_p8 }
  0x56   : > { %p1666_p9 = pnand %p1665_p7, %p1659_p6 }
  0x58   : > { %1669 = shalt.err (!%p1666_p9)
}
  0x59   : > { %1540 = dma.hbm_to_vmem [thread:$0]  (!%p2012_p11), %s2292_s5, 128, %s327_s17, [#allocation9]  }
  0x5a   : > { %s350_s9 = scalar_lea.sflag [#allocation3], %s1926_s18  ;;  %s1670_s26 = scalar_lea.hbm %s2021_s11, 512 }
  0x5b   : > { %p1671_p3 = scmp.ne.s32.totalorder %s2021_s11, %s1670_s26  ;;  %p2334_p8 = scmp.ne.s32.totalorder %s2325_s16, 0 }
  0x5c   : > { %s1675_s1 = scalar_lea.hbm %s2287_s0, 1024  ;;  %p1676_p7 = scmp.lt.u32.totalorder %s2021_s11, %s2287_s0 }
  0x5d   : > { %p1673_p1 = pnand %p1671_p3, %p2334_p8  ;;  %p1677_p9 = scmp.lt.u32.totalorder %s1675_s1, %s1670_s26 }
  0x5e   : > { %p1679_p12 = scmp.lt.u32.totalorder %s1670_s26, %s2021_s11 }
  0x5f   : > { %p1674_p4 = pneg %p1673_p1  ;;  %p1678_p6 = por %p1677_p9, %p1676_p7 }
  0x61   : > { %p1680_p0 = por %p1679_p12, %p1678_p6 }
  0x63   : > { %p1681_p2 = pnand %p1680_p0, %p1674_p4 }
  0x65   : > { %1684 = shalt.err (!%p1681_p2)
}
  0x66   : > { %s1685_s17 = scalar_lea.vmem %s2025_s25, 512  ;;  %s1826_s8 = smov [#allocation2]  }
  0x67   : > { %p1686_p11 = scmp.ne.s32.totalorder %s2025_s25, %s1685_s17  ;;  %s1690_s30 = sshll.u32 %s1826_s8, 4  ;;  %s1691_s30 = int_to_ptr.vmem [resolvable:$false] %s1690_s30 }
  0x68   : > { %s1692_s28 = scalar_lea.vmem %s1691_s30, 1024  ;;  %p1693_p13 = scmp.lt.s32.totalorder %s2025_s25, %s1691_s30 }
  0x69   : > { %p1688_p5 = pnand %p1686_p11, %p2334_p8  ;;  %p1694_p3 = scmp.lt.s32.totalorder %s1692_s28, %s1685_s17 }
  0x6b   : > { %p1689_p10 = pneg %p1688_p5  ;;  %p1695_p1 = por %p1694_p3, %p1693_p13 }
  0x6d   : > { %p1696_p7 = pnand %p1695_p1, %p1689_p10 }
  0x6f   : > { %1699 = shalt.err (!%p1696_p7)
}
  0x70   : > { %s1827_s26 = smov 128   ;;  %s1828_s15 = smov 8  }
  0x71   : > { %p2335_p4 = scmp.ne.s32.totalorder %s2322_s19, 0  ;;  %s2075_s14 = scalar_lea.hbm %s2289_s2, %s1452_s20 }
  0x72   : > { %s399_s17 = scalar_lea.vmem [#allocation7], %s1412_s21  ;;  %s1700_s30 = scalar_lea.hbm %s2075_s14, 512 }
  0x73   : > { %1544 = dma.hbm_to_vmem [thread:$0]  (!%p2335_p4), %s2021_s11, 512, %s2025_s25, %s350_s9, %s1827_s26, %s1827_s26, %s1828_s15  }
  0x74   : > { %s408_s8 = sshll.u32 %s399_s17, 4  ;;  %p1701_p9 = scmp.ne.s32.totalorder %s2075_s14, %s1700_s30  ;;  %s2079_s8 = int_to_ptr.vmem [resolvable:$true] %s408_s8 }
  0x75   : > { %s1705_s9 = scalar_lea.hbm %s2289_s2, 1024  ;;  %p1706_p0 = scmp.lt.u32.totalorder %s2075_s14, %s2289_s2 }
  0x76   : > { %p1703_p6 = pnand %p1701_p9, %p2334_p8  ;;  %p1707_p2 = scmp.lt.u32.totalorder %s1705_s9, %s1700_s30 }
  0x77   : > { %p1709_p5 = scmp.lt.u32.totalorder %s1700_s30, %s2075_s14 }
  0x78   : > { %p1704_p12 = pneg %p1703_p6  ;;  %p1708_p11 = por %p1707_p2, %p1706_p0 }
  0x7a   : > { %p1710_p10 = por %p1709_p5, %p1708_p11 }
  0x7c   : > { %p1711_p13 = pnand %p1710_p10, %p1704_p12 }
  0x7e   : > { %1714 = shalt.err (!%p1711_p13)
}
  0x7f   : > { %s1715_s18 = scalar_lea.vmem %s2079_s8, 512  ;;  %s1829_s21 = smov [#allocation7]  }
  0x80   : > { %p1716_p3 = scmp.ne.s32.totalorder %s2079_s8, %s1715_s18  ;;  %s1720_s1 = sshll.u32 %s1829_s21, 4  ;;  %s1721_s1 = int_to_ptr.vmem [resolvable:$false] %s1720_s1 }
  0x81   : > { %s1722_s22 = scalar_lea.vmem %s1721_s1, 1024  ;;  %p1723_p9 = scmp.lt.s32.totalorder %s2079_s8, %s1721_s1 }
  0x82   : > { %p1718_p1 = pnand %p1716_p3, %p2334_p8  ;;  %p1724_p6 = scmp.lt.s32.totalorder %s1722_s22, %s1715_s18 }
  0x84   : > { %p1719_p7 = pneg %p1718_p1  ;;  %p1725_p0 = por %p1724_p6, %p1723_p9 }
  0x86   : > { %p1726_p2 = pnand %p1725_p0, %p1719_p7 }
  0x88   : > { %1729 = shalt.err (!%p1726_p2)
}
  0x89   : > { %1550 = dma.hbm_to_vmem [thread:$0]  (!%p2335_p4), %s2075_s14, 512, %s2079_s8, %s1945_s29, %s1827_s26, %s1827_s26, %s1828_s15  }
  0x8a   : > { %p2336_p8 = scmp.ne.s32.totalorder %s2332_s24, 0 }
  0x8b   : > { %s2109_s16 = sand.u32 (!%p2336_p8), 1, %s1804_s10   ;;  %p2337_p12 = scmp.ne.s32.totalorder (!%p2336_p8), %s2326_s23, 0 }
  0x8c   : > { %436 = sbr.rel (%p2336_p8) target bundleno = 836 (0x344), region = 56  ;;  %s1422_s17 = sshll.u32 (!%p2336_p8), %s2109_s16, 5 }
  0x8d   : > { %s439_s30 = scalar_lea.sflag (!%p2336_p8), [#allocation3], %s2109_s16  ;;  %s2113_s11 = scalar_lea.vmem (!%p2336_p8), [#allocation2], %s1422_s17 }
  0x93   : > { %1783 = dma.done.wait (%p2337_p12), %s439_s30, 512  }
  0x94   : > { %1785 = vsyncadd (%p2337_p12), %s439_s30, 4294966784  ;;  %s447_s19 = sand.u32 1, %s1976_s27   ;;  %s1423_s29 = sshll.u32 %s2109_s16, 2 }
  0x95   : > { %s448_s24 = scalar_lea.sflag [#allocation6], %s447_s19  ;;  %s2121_s26 = scalar_lea.vmem [#allocation5], %s1423_s29 }
  0x96   : > { %1787 = dma.done.wait (%p2337_p12), %s448_s24, 576  }
  0x97   : > { %1789 = vsyncadd (%p2337_p12), %s448_s24, 4294966720  ;;  %s2127_s15 = scalar_lea.vmem [#allocation7], %s1422_s17  ;;  %p2338_p4 = scmp.eq.s32.totalorder %s1976_s27, 0 }
  0x99   : > { %1791 = dma.done.wait (%p2338_p4), [#allocation9], 128   ;;  %p2339_p11 = pmov %p2338_p4 }
  0x9a   : > { %p531_p5 = scmp.lt.s32.totalorder %s1812_s12, 1  ;;  %vm612_vm0 = vcmask 64512   ;;  %v609_v1 = vld [vmem:[%s2291_s4] sm:$0xff]  ;;  %v610_v2 = vld [vmem:[%s2291_s4 + $0x8] sm:$0xff]  ;;  %vm910_vm1 = vcmask 1043456   ;;  %vm903_vm2 = vcmask 31744  }
  0x9b   : > { %1793 = vsyncadd (%p2339_p11), [#allocation9], 4294967168  ;;  %1485 = vmatprep.mubr.msk.f32.mxu1 %vm612_vm0, %v609_v1  ;;  %v900_v5 = vld [vmem:[%s2294_s7] sm:$0xff]  ;;  %v901_v7 = vld [vmem:[%s2294_s7 + $0x8] sm:$0xff]  ;;  %vm591_vm9 = vcmask 130048   ;;  %s1449_s9 = sshll.u32 %s1812_s12, 4 }
  0x9c   : > { %s532_s14 = scalar_select %p531_p5, %s1812_s12, 1  ;;  %v611_v8 = vld [vmem:[#allocation8] sm:$0xff]  ;;  %v556_v20 = vld [vmem:[%s2113_s11] sm:$0xff]  ;;  %v559_v21 = vld [vmem:[%s2113_s11 + $0x18] sm:$0xff] }
  0x9d   : > { %1493 = vmatprep.subr.mxu0 %v611_v8  ;;  %v557_v18 = vld [vmem:[%s2113_s11 + $0x8] sm:$0xff]  ;;  %v558_v22 = vld [vmem:[%s2113_s11 + $0x10] sm:$0xff]  ;;  %vm560_vm4 = vcmp.ne.f32.partialorder %v556_v20, %v556_v20  ;;  %vm563_vm5 = vcmp.ne.f32.partialorder %v559_v21, %v559_v21  ;;  %v576_v28 = vld [vmem:[%s2127_s15 + $0x10] sm:$0xff]  ;;  %s2346_s1 = sld [smem:[#allocation24_spill]]  ;;  %s1201_s12 = scalar_lea.sflag [#allocation4], %s2109_s16 }
  0x9e   : > { %s1455_s8 = sshll.u32 %s532_s14, 4  ;;  %s1456_s25 = sshll.u32 %s532_s14, 3  ;;  %1494 = vmatpush3.msra.mxu0 %v611_v8  ;;  %vm561_vm3 = vcmp.ne.f32.partialorder %v557_v18, %v557_v18  ;;  %vm562_vm6 = vcmp.ne.f32.partialorder %v558_v22, %v558_v22  ;;  %v2184_v23 = vsel %vm560_vm4, 0.0, %v556_v20  ;;  %v2186_v24 = vsel %vm563_vm5, 0.0, %v559_v21  ;;  %v574_v26 = vld [vmem:[%s2127_s15] sm:$0xff]  ;;  %v575_v27 = vld [vmem:[%s2127_s15 + $0x8] sm:$0xff] }
  0x9f   : > { %s535_s28 = scalar_lea.vmem %s2290_s3, %s1455_s8  ;;  %s546_s21 = scalar_lea.vmem %s2293_s6, %s1456_s25  ;;  %v2179_v19 = vsel %vm561_vm3, 0.0, %v557_v18  ;;  %v2188_v25 = vsel %vm562_vm6, 0.0, %v558_v22  ;;  %v577_v29 = vld [vmem:[%s2127_s15 + $0x18] sm:$0xff]  ;;  %v578_v30 = vsub.f32 %v574_v26, %v2184_v23 }
  0xa0   : > { %v607_v0 = vld [vmem:[%s535_s28] sm:$0xff]  ;;  %v608_v3 = vld [vmem:[%s535_s28 + $0x8] sm:$0xff]  ;;  %s2340_s25 = sld [smem:[#allocation23_spill]]  ;;  %v579_v31 = vsub.f32 %v575_v27, %v2179_v19  ;;  %v580_v32 = vsub.f32 %v576_v28, %v2188_v25  ;;  %v581_v33 = vsub.f32 %v577_v29, %v2186_v24  ;;  %s2345_s15 = sld [smem:[#allocation20_spill]] }
  0xa1   : > { %1483 = vmatprep.subr.mxu1 %v607_v0  ;;  %v898_v4 = vld [vmem:[%s546_s21] sm:$0xf]  ;;  %v899_v6 = vld [vmem:[%s546_s21 + $0x4] sm:$0xf]  ;;  %v582_v35 = vand.u32 2147483647, %v578_v30 }
  0xa2   : > { %1484 = vmatpush3.msra.mxu1 %v607_v0  ;;  %v1458_v34 = vld [vmem:[%s2121_s26] sm:$0xf]   ;;  %v583_v36 = vand.u32 2147483647, %v579_v31  ;;  %v584_v39 = vand.u32 2147483647, %v580_v32 }
  0xa3   : > { %1486 = vmatmul.mubr.msk.f32.vlgmr.msra.gmra.mrb[0].mxu1 %vm612_vm0, %v610_v2  ;;  %1488 = vmatprep.subr.mxu1 %v608_v3  ;;  %v1459_v37 = vunpack.c.0.s8 %v1458_v34  ;;  %v1460_v38 = vunpack.c.1.s8 %v1458_v34  ;;  %v585_v40 = vand.u32 2147483647, %v581_v33  ;;  %s527_s28 = scalar_lea.vmem [#allocation10], %s2109_s16  ;;  %s2238_s22 = scalar_lea.hbm %s2346_s1, %s1449_s9 }
  0xa4   : > { %1489 = vmatpush3.msra.mxu1 %v608_v3  ;;  %1490 = vmatprep.mubr.msk.f32.mxu1 %vm612_vm0, %v609_v1  ;;  %v586_v43 = vadd.f32 %v584_v39, %v582_v35  ;;  %s1214_s23 = sshll.u32 %s527_s28, 4  ;;  %s1830_s17 = smov [#allocation10]   ;;  %s2240_s23 = int_to_ptr.vmem [resolvable:$true] %s1214_s23 }
  0xa5   : > { %1501 = vmatprep.subr.msk.mxu1 %vm910_vm1, %v898_v4  ;;  %vm2199_vm7 = vcmp.ne.s32.totalorder %v1459_v37, 0  ;;  %vm2203_vm8 = vcmp.ne.s32.totalorder %v1460_v38, 0  ;;  %v587_v44 = vadd.f32 %v585_v40, %v583_v36  ;;  %s1730_s27 = scalar_lea.vmem %s2240_s23, 16  ;;  %s1734_s30 = sshll.u32 %s1830_s17, 4  ;;  %s1735_s30 = int_to_ptr.vmem [resolvable:$false] %s1734_s30 }
  0xa6   : > { %v902_v9 = vld [vmem:[%s2340_s25] sm:$0xf]  ;;  %v588_v45 = vsel %vm2199_vm7, %v586_v43, 0.0  ;;  %p1731_p10 = scmp.ne.s32.totalorder %s2240_s23, %s1730_s27  ;;  %p2347_p13 = scmp.ne.s32.totalorder %s2345_s15, 0 }
  0xa7   : > { %1491 = vmatmul.mubr.msk.f32.vlgmr.msra.gmra.mrb[2].mxu1 %vm612_vm0, %v610_v2  ;;  %1511 = vmatprep.subr.msk.mxu0 %vm910_vm1, %v902_v9  ;;  %v589_v46 = vsel %vm2203_vm8, %v587_v44, 0.0  ;;  %v592_v47 = vsel %vm591_vm9, %v588_v45, 0.0  ;;  %s1736_s19 = scalar_lea.vmem %s1735_s30, 32  ;;  %p1737_p7 = scmp.lt.s32.totalorder %s2240_s23, %s1735_s30 }
  0xa8   : > { %1502 = vmatpush3.msk.msra.mxu1 %vm910_vm1, %v898_v4  ;;  %1503 = vmatprep.mubr.msk.f32.mxu1 %vm903_vm2, %v900_v5  ;;  %v593_v48 = vsel %vm591_vm9, %v589_v46, 0.0  ;;  %p1732_p3 = pnand %p1731_p10, %p2347_p13  ;;  %p1738_p9 = scmp.lt.s32.totalorder %s1736_s19, %s1730_s27 }
  0xa9   : > { %1506 = vmatprep.subr.msk.mxu1 %vm910_vm1, %v899_v6  ;;  %v594_v49 = vadd.f32 %v593_v48, %v592_v47 }
  0xaa   : > { %p1733_p1 = pneg %p1732_p3  ;;  %p1739_p6 = por %p1738_p9, %p1737_p7 }
  0xab   : > { %1504 = vmatmul.mubr.msk.f32.vlgmr.msra.gmra.mrb[4].mxu1 %vm903_vm2, %v901_v7  ;;  %595 = vadd.xlane.f32.xlu0 %v594_v49 }
  0xac   : > { %1507 = vmatpush3.msk.msra.mxu1 %vm910_vm1, %v899_v6  ;;  %1508 = vmatprep.mubr.msk.f32.mxu1 %vm903_vm2, %v900_v5  ;;  %p1740_p0 = pnand %p1739_p6, %p1733_p1 }
  0xaf   : > { %1509 = vmatmul.mubr.msk.f32.vlgmr.msra.gmra.mrb[6].mxu1 %vm903_vm2, %v901_v7 }
 0x176   : > { %v1487_v10 = vpop.f32.mrb[0].mxu1 }
 0x177   : > { %v685_v11 = vpop.f32.mrb[1].mxu1 }
 0x178   : > { %1495 = vmatprep.mubr.msk.f32.mxu0 %vm612_vm0, %v685_v11 }
 0x179   : > { %1496 = vmatmul.mubr.msk.f32.vlgmr.msra.gmra.mrb[0].mxu0 %vm612_vm0, %v1487_v10 }
 0x17a   : > { %v1492_v12 = vpop.f32.mrb[2].mxu1  ;;  %1512 = vmatpush3.msk.msra.mxu0 %vm910_vm1, %v902_v9 }
 0x17b   : > { %v760_v13 = vpop.f32.mrb[3].mxu1 }
 0x17c   : > { %1498 = vmatprep.mubr.msk.f32.mxu0 %vm612_vm0, %v760_v13 }
 0x17d   : > { %1499 = vmatmul.mubr.msk.f32.gmra.mrb[2].mxu0 %vm612_vm0, %v1492_v12 }
 0x17e   : > { %v1505_v14 = vpop.f32.mrb[4].mxu1 }
 0x17f   : > { %v980_v15 = vpop.f32.mrb[5].mxu1 }
 0x180   : > { %1513 = vmatprep.mubr.msk.f32.mxu0 %vm903_vm2, %v980_v15 }
 0x181   : > { %1514 = vmatmul.mubr.msk.f32.vlgmr.msra.gmra.mrb[4].mxu0 %vm903_vm2, %v1505_v14 }
 0x182   : > { %v1510_v16 = vpop.f32.mrb[6].mxu1 }
 0x183   : > { %v1058_v17 = vpop.f32.mrb[7].mxu1 }
 0x184   : > { %1516 = vmatprep.mubr.msk.f32.mxu0 %vm903_vm2, %v1058_v17 }
 0x185   : > { %1517 = vmatmul.mubr.msk.f32.gmra.mrb[6].mxu0 %vm903_vm2, %v1510_v16 }
 0x24c   : > { %v1497_v50 = vpop.f32.mrb[0].mxu0 }
 0x24d   : > { %v867_v51 = vmul.f32 2.0, %v1497_v50  ;;  %v847_v52 = vpop.f32.mrb[1].mxu0 }
 0x24e   : > { %v866_v53 = vmul.f32 2.0, %v847_v52 }
 0x24f   : > { %v871_v55 = vsub.f32 %v867_v51, %v2179_v19 }
 0x250   : > { %v1500_v54 = vpop.f32.mrb[2].mxu0  ;;  %v870_v58 = vsub.f32 %v866_v53, %v2184_v23  ;;  %v554_v53 = vlaneseq }
 0x251   : > { %v869_v56 = vmul.f32 2.0, %v1500_v54  ;;  %v857_v57 = vpop.f32.mrb[3].mxu0  ;;  %v875_v63 = vand.u32 2147483647, %v871_v55 }
 0x252   : > { %v868_v59 = vmul.f32 2.0, %v857_v57  ;;  %v874_v3 = vand.u32 2147483647, %v870_v58  ;;  %v555_v54 = vand.u32 127, %v554_v53 }
 0x253   : > { %v873_v60 = vsub.f32 %v869_v56, %v2186_v24 }
 0x254   : > { %v872_v61 = vsub.f32 %v868_v59, %v2188_v25  ;;  %v1515_v62 = vpop.f32.mrb[4].mxu0  ;;  %vm882_vm10 = vcmp.eq.s32.totalorder %v555_v54, 1  ;;  %vm590_vm11 = vcmp.eq.s32.totalorder %v555_v54, 0  ;;  %vm1183_vm12 = vcmp.eq.s32.totalorder %v555_v54, 2 }
 0x255   : > { %v877_v0 = vand.u32 2147483647, %v873_v60  ;;  %v1168_v1 = vmul.f32 4.0, %v1515_v62  ;;  %v1148_v2 = vpop.f32.mrb[5].mxu0 }
 0x256   : > { %v876_v4 = vand.u32 2147483647, %v872_v61  ;;  %v1167_v5 = vmul.f32 4.0, %v1148_v2 }
 0x257   : > { %v879_v6 = vadd.f32 %v877_v0, %v875_v63  ;;  %v1172_v9 = vsub.f32 %v1168_v1, %v2179_v19 }
 0x258   : > { %v878_v7 = vadd.f32 %v876_v4, %v874_v3  ;;  %v1518_v8 = vpop.f32.mrb[6].mxu0  ;;  %v1171_v13 = vsub.f32 %v1167_v5, %v2184_v23 }
 0x259   : > { %v1170_v10 = vmul.f32 4.0, %v1518_v8  ;;  %v1158_v11 = vpop.f32.mrb[7].mxu0  ;;  %v881_v12 = vsel %vm2203_vm8, %v879_v6, 0.0  ;;  %v1176_v21 = vand.u32 2147483647, %v1172_v9 }
 0x25a   : > { %v1169_v14 = vmul.f32 4.0, %v1158_v11  ;;  %v880_v15 = vsel %vm2199_vm7, %v878_v7, 0.0  ;;  %v884_v16 = vsel %vm591_vm9, %v881_v12, 0.0  ;;  %v1175_v26 = vand.u32 2147483647, %v1171_v13 }
 0x25b   : > { %v1174_v17 = vsub.f32 %v1170_v10, %v2186_v24  ;;  %v883_v18 = vsel %vm591_vm9, %v880_v15, 0.0 }
 0x25c   : > { %v1173_v20 = vsub.f32 %v1169_v14, %v2188_v25  ;;  %v885_v19 = vadd.f32 %v884_v16, %v883_v18  ;;  %v596_v25 = vpop.xlane.xlu0 %595 }
 0x25d   : > { %v1178_v22 = vand.u32 2147483647, %v1174_v17  ;;  %v597_v33 = vrot.slane %v596_v25, 4 }
 0x25e   : > { %v1177_v27 = vand.u32 2147483647, %v1173_v20  ;;  %886 = vadd.xlane.f32.xlu0 %v885_v19 }
 0x25f   : > { %v1180_v28 = vadd.f32 %v1178_v22, %v1176_v21  ;;  %v598_v34 = vadd.f32 %v597_v33, %v596_v25 }
 0x260   : > { %v1179_v23 = vadd.f32 %v1177_v27, %v1175_v26 }
 0x261   : > { %v1182_v29 = vsel %vm2203_vm8, %v1180_v28, 0.0  ;;  %v599_v35 = vrot.slane %v598_v34, 2 }
 0x262   : > { %v1181_v30 = vsel %vm2199_vm7, %v1179_v23, 0.0  ;;  %v1185_v24 = vsel %vm591_vm9, %v1182_v29, 0.0 }
 0x263   : > { %v1184_v31 = vsel %vm591_vm9, %v1181_v30, 0.0  ;;  %v600_v36 = vadd.f32 %v599_v35, %v598_v34 }
 0x264   : > { %v1186_v32 = vadd.f32 %v1185_v24, %v1184_v31 }
 0x265   : > { %v601_v37 = vrot.slane %v600_v36, 1 }
 0x266   : > { %1187 = vadd.xlane.f32.xlu1 %v1186_v32 }
 0x267   : > { %v602_v38 = vadd.f32 %v601_v37, %v600_v36 }
 0x269   : > { %1519 = vpush %v602_v38 }
 0x29a   : > { %s1520_s11 = spop %1519 }
 0x29b   : > { %v604_v56 = vstv %s1520_s11 }
 0x29c   : > { %v605_v58 = vsel %vm590_vm11, %v604_v56, 0.0 }
 0x2eb   : > { %v887_v39 = vpop.xlane.xlu0 %886 }
 0x2ec   : > { %v888_v40 = vrot.slane %v887_v39, 4 }
 0x2ee   : > { %v889_v42 = vadd.f32 %v888_v40, %v887_v39 }
 0x2f0   : > { %v890_v43 = vrot.slane %v889_v42, 2 }
 0x2f2   : > { %v891_v41 = vadd.f32 %v890_v43, %v889_v42 }
 0x2f3   : > { %v1188_v44 = vpop.xlane.xlu1 %1187 }
 0x2f4   : > { %v1189_v45 = vrot.slane %v1188_v44, 4  ;;  %v892_v46 = vrot.slane %v891_v41, 1 }
 0x2f6   : > { %v1190_v47 = vadd.f32 %v1189_v45, %v1188_v44  ;;  %v893_v48 = vadd.f32 %v892_v46, %v891_v41 }
 0x2f8   : > { %v1191_v49 = vrot.slane %v1190_v47, 2  ;;  %1521 = vpush %v893_v48 }
 0x2fa   : > { %v1192_v50 = vadd.f32 %v1191_v49, %v1190_v47 }
 0x2fc   : > { %v1193_v51 = vrot.slane %v1192_v50, 1 }
 0x2fe   : > { %v1194_v52 = vadd.f32 %v1193_v51, %v1192_v50 }
 0x300   : > { %1523 = vpush %v1194_v52 }
 0x329   : > { %s1522_s26 = spop %1521 }
 0x32a   : > { %v895_v55 = vstv %s1522_s26 }
 0x32b   : > { %v896_v57 = vsel %vm882_vm10, %v895_v55, 0.0 }
 0x32c   : > { %v897_v59 = vadd.f32 %v896_v57, %v605_v58 }
 0x331   : > { %s1524_s20 = spop %1523 }
 0x332   : > { %v1196_v60 = vstv %s1524_s20 }
 0x333   : > { %v1197_v61 = vsel %vm1183_vm12, %v1196_v60, 0.0 }
 0x334   : > { %v1198_v62 = vadd.f32 %v1197_v61, %v897_v59 }
 0x336   : > { %1199 = vst [vmem:[%s527_s28] sm:$0x1] %v1198_v62 }
 0x337   : > { %1743 = shalt.err (!%p1740_p0)
}
 0x338   : > { %s1744_s16 = scalar_lea.hbm %s2238_s22, 16  ;;  %s1748_s14 = scalar_lea.hbm %s2346_s1, 32 }
 0x339   : > { %p1745_p2 = scmp.ne.s32.totalorder %s2238_s22, %s1744_s16  ;;  %p1749_p4 = scmp.lt.u32.totalorder %s2238_s22, %s2346_s1 }
 0x33a   : > { %p1750_p11 = scmp.lt.u32.totalorder %s1748_s14, %s1744_s16  ;;  %p1752_p10 = scmp.lt.u32.totalorder %s1744_s16, %s2238_s22 }
 0x33b   : > { %p1746_p8 = pnand %p1745_p2, %p2347_p13 }
 0x33c   : > { %p1751_p5 = por %p1750_p11, %p1749_p4 }
 0x33d   : > { %p1747_p12 = pneg %p1746_p8 }
 0x33e   : > { %p1753_p3 = por %p1752_p10, %p1751_p5 }
 0x340   : > { %p1754_p1 = pnand %p1753_p3, %p1747_p12 }
 0x342   : > { %1757 = shalt.err (!%p1754_p1)
}
 0x343   : > { %1535 = dma.vmem_to_hbm [thread:$0]  (%p2347_p13), %s2240_s23, 16, %s2238_s22, %s1201_s12  }
 0x344 PF: > { %s2348_s11 = sld [smem:[#allocation15_spill]]  ;;  %s2349_s26 = sld [smem:[#allocation21_spill]] }
 0x345   : > { %s2350_s9 = sld [smem:[#allocation17_spill]] }
 0x34a   : > { %s1226_s20 = sand.u32 1, %s2348_s11   ;;  %p2351_p7 = scmp.ne.s32.totalorder %s2349_s26, 0 }
 0x34b   : > { %p2352_p9 = scmp.ge.s32.totalorder %s2350_s9, 2  ;;  %s1227_s28 = scalar_lea.sflag [#allocation4], %s1226_s20 }
 0x34d   : > { %p1552_p6 = pnand %p2352_p9, %p2351_p7 }
 0x34f   : > { %1795 = dma.done.wait (!%p1552_p6), %s1227_s28, 16  }
 0x350   : > { %1797 = vsyncadd (!%p1552_p6), %s1227_s28, 4294967280  ;;  %s29_s14 = sadd.s32 1, %s2350_s9   ;;  %s2353_s18 = sld [smem:[#allocation16_spill]] }
 0x351   : > { %p26_p0 = scmp.ge.s32.totalorder %s29_s14, 4   ;;  %s2354_s11 = sld [smem:[#allocation19_spill]] }
 0x352   : > { %s2355_s15 = sld [smem:[#allocation18_spill]]  ;;  %s2356_s30 = smov %s1804_s10 }
 0x353   : > { %s2358_s12 = smov %s1816_s13  ;;  %28 = sbr.rel (!%p26_p0) target bundleno = 13 (0xd), region = 141 }
 0x356   : > { %s2357_s10 = smov %s2353_s18 }
 0x358   : > { %s2359_s13 = smov %s2355_s15 }
 0x35a   :  { %1231 = vsyncpa [#allocation3], 1 }
 0x35b   :  { %1233 = vsyncpa [#allocation3 + $0x1], 1 }
 0x35c   :  { %1234 = vsyncpa [#allocation6], 1 }
 0x35d   :  { %1236 = vsyncpa [#allocation6 + $0x1], 1 }
 0x35e   :  { %1237 = vsyncpa [#allocation9], 1 }
 0x35f   :  { %1238 = vsyncpa [#allocation4], 1 }
 0x360   :  { %1240 = vsyncpa [#allocation4 + $0x1], 1 }

// kernel: tpu_custom_call.1
= control target key start
LH: loop header
LB: loop body
LE: loop exit
PB: predicated region body
PF: predicated region fallthrough
CT: control target
= control target key end

     0   :  { %s2287_s0 = inlined_call_operand.hbm [shape: f32[2,2,16,16], index: 0, kind: input, shape index: {}]   ;;  %s2288_s1 = inlined_call_operand.hbm [shape: s8[2,16,16], index: 1, kind: input, shape index: {}]   ;;  %s2289_s2 = inlined_call_operand.hbm [shape: f32[2,2,16,16], index: 2, kind: input, shape index: {}]   ;;  %s2290_s3 = inlined_call_operand.vmem [shape: f32[2,2,8,8], index: 3, kind: input, shape index: {}]   ;;  %s2291_s4 = inlined_call_operand.vmem [shape: f32[16,8], index: 4, kind: input, shape index: {}]   ;;  %s2292_s5 = inlined_call_operand.hbm [shape: f32[8,16], index: 5, kind: input, shape index: {}]   ;;  %s2293_s6 = inlined_call_operand.vmem [shape: f32[2,2,4,4], index: 6, kind: input, shape index: {}]   ;;  %s2294_s7 = inlined_call_operand.vmem [shape: f32[16,4], index: 7, kind: input, shape index: {}]   ;;  %s2295_s8 = inlined_call_operand.vmem [shape: f32[4,16], index: 8, kind: input, shape index: {}]   ;;  %s2296_s9 = inlined_call_operand.hbm [shape: f32[2,1,128], index: 9, kind: output, shape index: {}]  }
   0x1   :  { %2315 = sst [smem:[#allocation22_spill]] %s2288_s1 }
   0x2   :  { %2316 = sst [smem:[#allocation23_spill]] %s2295_s8 }
   0x3   :  { %2317 = sst [smem:[#allocation24_spill]] %s2296_s9 }
   0x4   :  { %14 = vsyncpa [#allocation3], 0 }
   0x5   :  { %16 = vsyncpa [#allocation3 + $0x1], 0 }
   0x6   :  { %17 = vsyncpa [#allocation6], 0 }
   0x7   :  { %19 = vsyncpa [#allocation6 + $0x1], 0 }
   0x8   :  { %20 = vsyncpa [#allocation9], 0 }
   0x9   :  { %21 = vsyncpa [#allocation4], 0 }
   0xa   :  { %23 = vsyncpa [#allocation4 + $0x1], 0  ;;  %s1881_s30 = smov 0   ;;  %s1883_s10 = smov 0  }
   0xb   :  { %s1885_s11 = smov 0   ;;  %s1887_s12 = smov 0  }
   0xc   :  { %s1889_s13 = smov 0   ;;  %s1891_s14 = smov 0  }
   0xd LB: > { %2318 = sst [smem:[#allocation15_spill]] %s1800_s30  ;;  %s41_s15 = sadd.s32 1, %s1816_s13  ;;  %s1820_s14 = sphi %s1891_s14, %s29_s14   ;;  %s1816_s13 = sphi %s1889_s13, %s2359_s13   ;;  %s1812_s12 = sphi %s1887_s12, %s2358_s12   ;;  %s1808_s11 = sphi %s1885_s11, %s2354_s11   ;;  %s1804_s10 = sphi %s1883_s10, %s2357_s10   ;;  %s1800_s30 = sphi %s1881_s30, %s2356_s30  }
   0xe   : > { %2319 = sst [smem:[#allocation16_spill]] %s1808_s11  ;;  %s50_s16 = sadd.s32 1, %s1808_s11 }
   0xf   : > { %2320 = sst [smem:[#allocation17_spill]] %s1820_s14  ;;  %p43_p0 = scmp.ge.s32.totalorder %s41_s15, 2 }
  0x10   : > { %p2297_p1 = scmp.ne.s32.totalorder %s1808_s11, %s1804_s10  ;;  %p58_p2 = scmp.eq.s32.totalorder %s1820_s14, 0 }
  0x11   : > { %s2361_s15 = smov (%p43_p0, %s41_s15), 0  ;;  %p1556_p5 = scmp.lt.s32.totalorder %s1820_s14, 2 }
  0x12   : > { %2321 = sst [smem:[#allocation18_spill]] %s2361_s15  ;;  %p59_p4 = por %p58_p2, %p2297_p1 }
  0x13   : > { %s45_s17 = ssub.s32 %s1816_s13, %s2361_s15  ;;  %s1926_s18 = sand.u32 1, %s1808_s11  }
  0x14   : > { %p48_p6 = scmp.eq.s32.totalorder %s45_s17, 0  ;;  %p1928_p7 = pnand %p1556_p5, %p59_p4 }
  0x15   : > { %s372_s20 = sand.u32 1, %s1820_s14   ;;  %s1415_s21 = sshll.u32 %s1926_s18, 2 }
  0x16   : > { %s2322_s19 = scalar_select %p1928_p7, 1, 0 }
  0x17   : > { %s1935_s22 = scalar_select %p48_p6, %s1808_s11, %s50_s16  }
  0x18   : > { %s1453_s23 = sshll.u32 %s1816_s13, 6  ;;  %s2324_s1 = sld [smem:[#allocation22_spill]] }
  0x19   : > { %2323 = sst [smem:[#allocation19_spill]] %s1935_s22  ;;  %s376_s27 = scalar_lea.vmem [#allocation5], %s1415_s21 }
  0x1a   : > { %s385_s28 = sshll.u32 %s376_s27, 4  ;;  %s1945_s29 = scalar_lea.sflag [#allocation6], %s372_s20  ;;  %s1943_s28 = int_to_ptr.vmem [resolvable:$true] %s385_s28 }
  0x1b   : > { %p1951_p9 = pneg %p1928_p7 }
  0x1d   : > { %s2325_s16 = scalar_select %p1951_p9, 1, 0 }
  0x1e   : > { %s1941_s26 = scalar_lea.hbm %s2324_s1, %s1453_s23  ;;  %s1617_s21 = scalar_lea.hbm %s2324_s1, 128 }
  0x1f   : > { %s1612_s17 = scalar_lea.hbm %s1941_s26, 64  ;;  %p1618_p12 = scmp.lt.u32.totalorder %s1941_s26, %s2324_s1 }
  0x20   : > { %p1613_p8 = scmp.ne.s32.totalorder %s1941_s26, %s1612_s17  ;;  %p1619_p13 = scmp.lt.u32.totalorder %s1617_s21, %s1612_s17 }
  0x21   : > { %p1621_p2 = scmp.lt.u32.totalorder %s1612_s17, %s1941_s26 }
  0x22   : > { %p1615_p10 = pnand %p1951_p9, %p1613_p8  ;;  %p1620_p0 = por %p1619_p13, %p1618_p12 }
  0x24   : > { %p1616_p11 = pneg %p1615_p10  ;;  %p1622_p4 = por %p1621_p2, %p1620_p0 }
  0x26   : > { %p1623_p5 = pnand %p1622_p4, %p1616_p11 }
  0x28   : > { %1626 = shalt.err (!%p1623_p5)
}
  0x29   : > { %s1627_s20 = scalar_lea.vmem %s1943_s28, 64  ;;  %s1822_s23 = smov [#allocation5]  }
  0x2a   : > { %p1628_p6 = scmp.ne.s32.totalorder %s1943_s28, %s1627_s20  ;;  %s1632_s24 = sshll.u32 %s1822_s23, 4  ;;  %s1633_s24 = int_to_ptr.vmem [resolvable:$false] %s1632_s24 }
  0x2b   : > { %s1634_s25 = scalar_lea.vmem %s1633_s24, 128  ;;  %p1635_p3 = scmp.lt.s32.totalorder %s1943_s28, %s1633_s24 }
  0x2c   : > { %p1630_p8 = pnand %p1628_p6, %p1951_p9  ;;  %p1636_p1 = scmp.lt.s32.totalorder %s1634_s25, %s1627_s20 }
  0x2e   : > { %p1631_p10 = pneg %p1630_p8  ;;  %p1637_p12 = por %p1636_p1, %p1635_p3 }
  0x30   : > { %p1638_p13 = pnand %p1637_p12, %p1631_p10 }
  0x32   : > { %1641 = shalt.err (!%p1638_p13)
}
  0x33   : > { %s1823_s17 = smov 32   ;;  %s1824_s21 = smov 2  }
  0x34   : > { %1547 = dma.hbm_to_vmem [thread:$0]  (!%p1928_p7), %s1941_s26, 64, %s1943_s28, %s1945_s29, %s1823_s17, %s1823_s17, %s1824_s21  }
  0x35   : > { %s1976_s27 = sadd.s32 4294967295, %s1820_s14   ;;  %s1406_s20 = sadd.s32 4294967294, %s1820_s14  }
  0x36   : > { %p63_p1 = scmp.ne.s32.totalorder %s1804_s10, %s1800_s30  ;;  %p2307_p3 = scmp.eq.s32.totalorder %s1976_s27, 0 }
  0x37   : > { %p291_p11 = scmp.eq.s32.totalorder %s1976_s27, 1  ;;  %p297_p0 = scmp.eq.s32.totalorder %s1406_s20, 1 }
  0x38   : > { %p1407_p2 = scmp.ge.s32.totalorder %s1820_s14, 1  ;;  %p1986_p4 = por %p2307_p3, %p63_p1 }
  0x39   : > { %p2327_p5 = scmp.ne.s32.totalorder %s1808_s11, %s1804_s10  ;;  %p1997_p8 = por %p297_p0, %p63_p1 }
  0x3a   : > { %s2326_s23 = scalar_select %p1986_p4, 1, 0 }
  0x3b   : > { %p1993_p6 = por %p291_p11, %p2327_p5  ;;  %p304_p10 = scmp.lt.s32.totalorder %s1820_s14, 3 }
  0x3c   : > { %s2330_s28 = scalar_select %p1997_p8, 1, 0 }
  0x3d   : > { %s2328_s26 = scalar_select %p1993_p6, 1, 0 }
  0x3e   : > { %2331 = sst [smem:[#allocation21_spill]] %s2330_s28  ;;  %p2002_p12 = pnand %p1407_p2, %p304_p10 }
  0x3f   : > { %2329 = sst [smem:[#allocation20_spill]] %s2328_s26  ;;  %s1825_s25 = smov [#allocation8]  }
  0x40   : > { %s2332_s24 = scalar_select %p2002_p12, 1, 0 }
  0x41   : > { %s326_s17 = sshll.u32 %s1825_s25, 4  ;;  %p1537_p13 = pneg %p2002_p12  ;;  %s327_s17 = int_to_ptr.vmem [resolvable:$true] %s326_s17 }
  0x42   : > { %s1412_s21 = sshll.u32 %s1926_s18, 5  ;;  %s1452_s20 = sshll.u32 %s1816_s13, 9 }
  0x43   : > { %p2012_p11 = pnand %p1537_p13, %p2307_p3  ;;  %s2021_s11 = scalar_lea.hbm %s2287_s0, %s1452_s20 }
  0x44   : > { %s353_s14 = scalar_lea.vmem [#allocation2], %s1412_s21  ;;  %s1642_s9 = scalar_lea.hbm %s2292_s5, 128 }
  0x45   : > { %s362_s25 = sshll.u32 %s353_s14, 4  ;;  %p1643_p1 = scmp.ne.s32.totalorder %s2292_s5, %s1642_s9  ;;  %s2025_s25 = int_to_ptr.vmem [resolvable:$true] %s362_s25 }
  0x46   : > { %p1644_p0 = pneg %p2012_p11  ;;  %p1649_p10 = scmp.lt.u32.totalorder %s1642_s9, %s2292_s5 }
  0x48   : > { %p1645_p2 = pnand %p1644_p0, %p1643_p1 }
  0x4a   : > { %p1646_p5 = pneg %p1645_p2 }
  0x4c   : > { %p1651_p13 = pnand %p1649_p10, %p1646_p5 }
  0x4e   : > { %1654 = shalt.err (!%p1651_p13)
}
  0x4f   : > { %s1655_s14 = scalar_lea.vmem %s327_s17, 128  ;;  %p1663_p4 = scmp.lt.s32.totalorder %s327_s17, %s327_s17 }
  0x50   : > { %p1656_p3 = scmp.ne.s32.totalorder %s327_s17, %s1655_s14  ;;  %p1664_p12 = scmp.lt.s32.totalorder %s1655_s14, %s1655_s14 }
  0x52   : > { %p1658_p8 = pnand %p1656_p3, %p1644_p0  ;;  %p1665_p7 = por %p1664_p12, %p1663_p4 }
  0x54   : > { %p1659_p6 = pneg %p1658_p8 }
  0x56   : > { %p1666_p9 = pnand %p1665_p7, %p1659_p6 }
  0x58   : > { %1669 = shalt.err (!%p1666_p9)
}
  0x59   : > { %1540 = dma.hbm_to_vmem [thread:$0]  (!%p2012_p11), %s2292_s5, 128, %s327_s17, [#allocation9]  }
  0x5a   : > { %s350_s9 = scalar_lea.sflag [#allocation3], %s1926_s18  ;;  %s1670_s26 = scalar_lea.hbm %s2021_s11, 512 }
  0x5b   : > { %p1671_p3 = scmp.ne.s32.totalorder %s2021_s11, %s1670_s26  ;;  %p2334_p8 = scmp.ne.s32.totalorder %s2325_s16, 0 }
  0x5c   : > { %s1675_s1 = scalar_lea.hbm %s2287_s0, 1024  ;;  %p1676_p7 = scmp.lt.u32.totalorder %s2021_s11, %s2287_s0 }
  0x5d   : > { %p1673_p1 = pnand %p1671_p3, %p2334_p8  ;;  %p1677_p9 = scmp.lt.u32.totalorder %s1675_s1, %s1670_s26 }
  0x5e   : > { %p1679_p12 = scmp.lt.u32.totalorder %s1670_s26, %s2021_s11 }
  0x5f   : > { %p1674_p4 = pneg %p1673_p1  ;;  %p1678_p6 = por %p1677_p9, %p1676_p7 }
  0x61   : > { %p1680_p0 = por %p1679_p12, %p1678_p6 }
  0x63   : > { %p1681_p2 = pnand %p1680_p0, %p1674_p4 }
  0x65   : > { %1684 = shalt.err (!%p1681_p2)
}
  0x66   : > { %s1685_s17 = scalar_lea.vmem %s2025_s25, 512  ;;  %s1826_s8 = smov [#allocation2]  }
  0x67   : > { %p1686_p11 = scmp.ne.s32.totalorder %s2025_s25, %s1685_s17  ;;  %s1690_s30 = sshll.u32 %s1826_s8, 4  ;;  %s1691_s30 = int_to_ptr.vmem [resolvable:$false] %s1690_s30 }
  0x68   : > { %s1692_s28 = scalar_lea.vmem %s1691_s30, 1024  ;;  %p1693_p13 = scmp.lt.s32.totalorder %s2025_s25, %s1691_s30 }
  0x69   : > { %p1688_p5 = pnand %p1686_p11, %p2334_p8  ;;  %p1694_p3 = scmp.lt.s32.totalorder %s1692_s28, %s1685_s17 }
  0x6b   : > { %p1689_p10 = pneg %p1688_p5  ;;  %p1695_p1 = por %p1694_p3, %p1693_p13 }
  0x6d   : > { %p1696_p7 = pnand %p1695_p1, %p1689_p10 }
  0x6f   : > { %1699 = shalt.err (!%p1696_p7)
}
  0x70   : > { %s1827_s26 = smov 128   ;;  %s1828_s15 = smov 8  }
  0x71   : > { %p2335_p4 = scmp.ne.s32.totalorder %s2322_s19, 0  ;;  %s2075_s14 = scalar_lea.hbm %s2289_s2, %s1452_s20 }
  0x72   : > { %s399_s17 = scalar_lea.vmem [#allocation7], %s1412_s21  ;;  %s1700_s30 = scalar_lea.hbm %s2075_s14, 512 }
  0x73   : > { %1544 = dma.hbm_to_vmem [thread:$0]  (!%p2335_p4), %s2021_s11, 512, %s2025_s25, %s350_s9, %s1827_s26, %s1827_s26, %s1828_s15  }
  0x74   : > { %s408_s8 = sshll.u32 %s399_s17, 4  ;;  %p1701_p9 = scmp.ne.s32.totalorder %s2075_s14, %s1700_s30  ;;  %s2079_s8 = int_to_ptr.vmem [resolvable:$true] %s408_s8 }
  0x75   : > { %s1705_s9 = scalar_lea.hbm %s2289_s2, 1024  ;;  %p1706_p0 = scmp.lt.u32.totalorder %s2075_s14, %s2289_s2 }
  0x76   : > { %p1703_p6 = pnand %p1701_p9, %p2334_p8  ;;  %p1707_p2 = scmp.lt.u32.totalorder %s1705_s9, %s1700_s30 }
  0x77   : > { %p1709_p5 = scmp.lt.u32.totalorder %s1700_s30, %s2075_s14 }
  0x78   : > { %p1704_p12 = pneg %p1703_p6  ;;  %p1708_p11 = por %p1707_p2, %p1706_p0 }
  0x7a   : > { %p1710_p10 = por %p1709_p5, %p1708_p11 }
  0x7c   : > { %p1711_p13 = pnand %p1710_p10, %p1704_p12 }
  0x7e   : > { %1714 = shalt.err (!%p1711_p13)
}
  0x7f   : > { %s1715_s18 = scalar_lea.vmem %s2079_s8, 512  ;;  %s1829_s21 = smov [#allocation7]  }
  0x80   : > { %p1716_p3 = scmp.ne.s32.totalorder %s2079_s8, %s1715_s18  ;;  %s1720_s1 = sshll.u32 %s1829_s21, 4  ;;  %s1721_s1 = int_to_ptr.vmem [resolvable:$false] %s1720_s1 }
  0x81   : > { %s1722_s22 = scalar_lea.vmem %s1721_s1, 1024  ;;  %p1723_p9 = scmp.lt.s32.totalorder %s2079_s8, %s1721_s1 }
  0x82   : > { %p1718_p1 = pnand %p1716_p3, %p2334_p8  ;;  %p1724_p6 = scmp.lt.s32.totalorder %s1722_s22, %s1715_s18 }
  0x84   : > { %p1719_p7 = pneg %p1718_p1  ;;  %p1725_p0 = por %p1724_p6, %p1723_p9 }
  0x86   : > { %p1726_p2 = pnand %p1725_p0, %p1719_p7 }
  0x88   : > { %1729 = shalt.err (!%p1726_p2)
}
  0x89   : > { %1550 = dma.hbm_to_vmem [thread:$0]  (!%p2335_p4), %s2075_s14, 512, %s2079_s8, %s1945_s29, %s1827_s26, %s1827_s26, %s1828_s15  }
  0x8a   : > { %p2336_p8 = scmp.ne.s32.totalorder %s2332_s24, 0 }
  0x8b   : > { %s2109_s16 = sand.u32 (!%p2336_p8), 1, %s1804_s10   ;;  %p2337_p12 = scmp.ne.s32.totalorder (!%p2336_p8), %s2326_s23, 0 }
  0x8c   : > { %436 = sbr.rel (%p2336_p8) target bundleno = 836 (0x344), region = 56  ;;  %s1422_s17 = sshll.u32 (!%p2336_p8), %s2109_s16, 5 }
  0x8d   : > { %s439_s30 = scalar_lea.sflag (!%p2336_p8), [#allocation3], %s2109_s16  ;;  %s2113_s11 = scalar_lea.vmem (!%p2336_p8), [#allocation2], %s1422_s17 }
  0x93   : > { %1783 = dma.done.wait (%p2337_p12), %s439_s30, 512  }
  0x94   : > { %1785 = vsyncadd (%p2337_p12), %s439_s30, 4294966784  ;;  %s447_s19 = sand.u32 1, %s1976_s27   ;;  %s1423_s29 = sshll.u32 %s2109_s16, 2 }
  0x95   : > { %s448_s24 = scalar_lea.sflag [#allocation6], %s447_s19  ;;  %s2121_s26 = scalar_lea.vmem [#allocation5], %s1423_s29 }
  0x96   : > { %1787 = dma.done.wait (%p2337_p12), %s448_s24, 576  }
  0x97   : > { %1789 = vsyncadd (%p2337_p12), %s448_s24, 4294966720  ;;  %s2127_s15 = scalar_lea.vmem [#allocation7], %s1422_s17  ;;  %p2338_p4 = scmp.eq.s32.totalorder %s1976_s27, 0 }
  0x99   : > { %1791 = dma.done.wait (%p2338_p4), [#allocation9], 128   ;;  %p2339_p11 = pmov %p2338_p4 }
  0x9a   : > { %p531_p5 = scmp.lt.s32.totalorder %s1812_s12, 1  ;;  %vm612_vm0 = vcmask 64512   ;;  %v609_v1 = vld [vmem:[%s2291_s4] sm:$0xff]  ;;  %v610_v2 = vld [vmem:[%s2291_s4 + $0x8] sm:$0xff]  ;;  %vm910_vm1 = vcmask 1043456   ;;  %vm903_vm2 = vcmask 31744  }
  0x9b   : > { %1793 = vsyncadd (%p2339_p11), [#allocation9], 4294967168  ;;  %1485 = vmatprep.mubr.msk.f32.mxu1 %vm612_vm0, %v609_v1  ;;  %v900_v5 = vld [vmem:[%s2294_s7] sm:$0xff]  ;;  %v901_v7 = vld [vmem:[%s2294_s7 + $0x8] sm:$0xff]  ;;  %vm591_vm9 = vcmask 130048   ;;  %s1449_s9 = sshll.u32 %s1812_s12, 4 }
  0x9c   : > { %s532_s14 = scalar_select %p531_p5, %s1812_s12, 1  ;;  %v611_v8 = vld [vmem:[#allocation8] sm:$0xff]  ;;  %v556_v20 = vld [vmem:[%s2113_s11] sm:$0xff]  ;;  %v559_v21 = vld [vmem:[%s2113_s11 + $0x18] sm:$0xff] }
  0x9d   : > { %1493 = vmatprep.subr.mxu0 %v611_v8  ;;  %v557_v18 = vld [vmem:[%s2113_s11 + $0x8] sm:$0xff]  ;;  %v558_v22 = vld [vmem:[%s2113_s11 + $0x10] sm:$0xff]  ;;  %vm560_vm4 = vcmp.ne.f32.partialorder %v556_v20, %v556_v20  ;;  %vm563_vm5 = vcmp.ne.f32.partialorder %v559_v21, %v559_v21  ;;  %v576_v28 = vld [vmem:[%s2127_s15 + $0x10] sm:$0xff]  ;;  %s2346_s1 = sld [smem:[#allocation24_spill]]  ;;  %s1201_s12 = scalar_lea.sflag [#allocation4], %s2109_s16 }
  0x9e   : > { %s1455_s8 = sshll.u32 %s532_s14, 4  ;;  %s1456_s25 = sshll.u32 %s532_s14, 3  ;;  %1494 = vmatpush3.msra.mxu0 %v611_v8  ;;  %vm561_vm3 = vcmp.ne.f32.partialorder %v557_v18, %v557_v18  ;;  %vm562_vm6 = vcmp.ne.f32.partialorder %v558_v22, %v558_v22  ;;  %v2184_v23 = vsel %vm560_vm4, 0.0, %v556_v20  ;;  %v2186_v24 = vsel %vm563_vm5, 0.0, %v559_v21  ;;  %v574_v26 = vld [vmem:[%s2127_s15] sm:$0xff]  ;;  %v575_v27 = vld [vmem:[%s2127_s15 + $0x8] sm:$0xff] }
  0x9f   : > { %s535_s28 = scalar_lea.vmem %s2290_s3, %s1455_s8  ;;  %s546_s21 = scalar_lea.vmem %s2293_s6, %s1456_s25  ;;  %v2179_v19 = vsel %vm561_vm3, 0.0, %v557_v18  ;;  %v2188_v25 = vsel %vm562_vm6, 0.0, %v558_v22  ;;  %v577_v29 = vld [vmem:[%s2127_s15 + $0x18] sm:$0xff]  ;;  %v578_v30 = vsub.f32 %v574_v26, %v2184_v23 }
  0xa0   : > { %v607_v0 = vld [vmem:[%s535_s28] sm:$0xff]  ;;  %v608_v3 = vld [vmem:[%s535_s28 + $0x8] sm:$0xff]  ;;  %s2340_s25 = sld [smem:[#allocation23_spill]]  ;;  %v579_v31 = vsub.f32 %v575_v27, %v2179_v19  ;;  %v580_v32 = vsub.f32 %v576_v28, %v2188_v25  ;;  %v581_v33 = vsub.f32 %v577_v29, %v2186_v24  ;;  %s2345_s15 = sld [smem:[#allocation20_spill]] }
  0xa1   : > { %1483 = vmatprep.subr.mxu1 %v607_v0  ;;  %v898_v4 = vld [vmem:[%s546_s21] sm:$0xf]  ;;  %v899_v6 = vld [vmem:[%s546_s21 + $0x4] sm:$0xf]  ;;  %v582_v35 = vand.u32 2147483647, %v578_v30 }
  0xa2   : > { %1484 = vmatpush3.msra.mxu1 %v607_v0  ;;  %v1458_v34 = vld [vmem:[%s2121_s26] sm:$0xf]   ;;  %v583_v36 = vand.u32 2147483647, %v579_v31  ;;  %v584_v39 = vand.u32 2147483647, %v580_v32 }
  0xa3   : > { %1486 = vmatmul.mubr.msk.f32.vlgmr.msra.gmra.mrb[0].mxu1 %vm612_vm0, %v610_v2  ;;  %1488 = vmatprep.subr.mxu1 %v608_v3  ;;  %v1459_v37 = vunpack.c.0.s8 %v1458_v34  ;;  %v1460_v38 = vunpack.c.1.s8 %v1458_v34  ;;  %v585_v40 = vand.u32 2147483647, %v581_v33  ;;  %s527_s28 = scalar_lea.vmem [#allocation10], %s2109_s16  ;;  %s2238_s22 = scalar_lea.hbm %s2346_s1, %s1449_s9 }
  0xa4   : > { %1489 = vmatpush3.msra.mxu1 %v608_v3  ;;  %1490 = vmatprep.mubr.msk.f32.mxu1 %vm612_vm0, %v609_v1  ;;  %v586_v43 = vadd.f32 %v584_v39, %v582_v35  ;;  %s1214_s23 = sshll.u32 %s527_s28, 4  ;;  %s1830_s17 = smov [#allocation10]   ;;  %s2240_s23 = int_to_ptr.vmem [resolvable:$true] %s1214_s23 }
  0xa5   : > { %1501 = vmatprep.subr.msk.mxu1 %vm910_vm1, %v898_v4  ;;  %vm2199_vm7 = vcmp.ne.s32.totalorder %v1459_v37, 0  ;;  %vm2203_vm8 = vcmp.ne.s32.totalorder %v1460_v38, 0  ;;  %v587_v44 = vadd.f32 %v585_v40, %v583_v36  ;;  %s1730_s27 = scalar_lea.vmem %s2240_s23, 16  ;;  %s1734_s30 = sshll.u32 %s1830_s17, 4  ;;  %s1735_s30 = int_to_ptr.vmem [resolvable:$false] %s1734_s30 }
  0xa6   : > { %v902_v9 = vld [vmem:[%s2340_s25] sm:$0xf]  ;;  %v588_v45 = vsel %vm2199_vm7, %v586_v43, 0.0  ;;  %p1731_p10 = scmp.ne.s32.totalorder %s2240_s23, %s1730_s27  ;;  %p2347_p13 = scmp.ne.s32.totalorder %s2345_s15, 0 }
  0xa7   : > { %1491 = vmatmul.mubr.msk.f32.vlgmr.msra.gmra.mrb[2].mxu1 %vm612_vm0, %v610_v2  ;;  %1511 = vmatprep.subr.msk.mxu0 %vm910_vm1, %v902_v9  ;;  %v589_v46 = vsel %vm2203_vm8, %v587_v44, 0.0  ;;  %v592_v47 = vsel %vm591_vm9, %v588_v45, 0.0  ;;  %s1736_s19 = scalar_lea.vmem %s1735_s30, 32  ;;  %p1737_p7 = scmp.lt.s32.totalorder %s2240_s23, %s1735_s30 }
  0xa8   : > { %1502 = vmatpush3.msk.msra.mxu1 %vm910_vm1, %v898_v4  ;;  %1503 = vmatprep.mubr.msk.f32.mxu1 %vm903_vm2, %v900_v5  ;;  %v593_v48 = vsel %vm591_vm9, %v589_v46, 0.0  ;;  %p1732_p3 = pnand %p1731_p10, %p2347_p13  ;;  %p1738_p9 = scmp.lt.s32.totalorder %s1736_s19, %s1730_s27 }
  0xa9   : > { %1506 = vmatprep.subr.msk.mxu1 %vm910_vm1, %v899_v6  ;;  %v594_v49 = vadd.f32 %v593_v48, %v592_v47 }
  0xaa   : > { %p1733_p1 = pneg %p1732_p3  ;;  %p1739_p6 = por %p1738_p9, %p1737_p7 }
  0xab   : > { %1504 = vmatmul.mubr.msk.f32.vlgmr.msra.gmra.mrb[4].mxu1 %vm903_vm2, %v901_v7  ;;  %595 = vadd.xlane.f32.xlu0 %v594_v49 }
  0xac   : > { %1507 = vmatpush3.msk.msra.mxu1 %vm910_vm1, %v899_v6  ;;  %1508 = vmatprep.mubr.msk.f32.mxu1 %vm903_vm2, %v900_v5  ;;  %p1740_p0 = pnand %p1739_p6, %p1733_p1 }
  0xaf   : > { %1509 = vmatmul.mubr.msk.f32.vlgmr.msra.gmra.mrb[6].mxu1 %vm903_vm2, %v901_v7 }
 0x176   : > { %v1487_v10 = vpop.f32.mrb[0].mxu1 }
 0x177   : > { %v685_v11 = vpop.f32.mrb[1].mxu1 }
 0x178   : > { %1495 = vmatprep.mubr.msk.f32.mxu0 %vm612_vm0, %v685_v11 }
 0x179   : > { %1496 = vmatmul.mubr.msk.f32.vlgmr.msra.gmra.mrb[0].mxu0 %vm612_vm0, %v1487_v10 }
 0x17a   : > { %v1492_v12 = vpop.f32.mrb[2].mxu1  ;;  %1512 = vmatpush3.msk.msra.mxu0 %vm910_vm1, %v902_v9 }
 0x17b   : > { %v760_v13 = vpop.f32.mrb[3].mxu1 }
 0x17c   : > { %1498 = vmatprep.mubr.msk.f32.mxu0 %vm612_vm0, %v760_v13 }
 0x17d   : > { %1499 = vmatmul.mubr.msk.f32.gmra.mrb[2].mxu0 %vm612_vm0, %v1492_v12 }
 0x17e   : > { %v1505_v14 = vpop.f32.mrb[4].mxu1 }
 0x17f   : > { %v980_v15 = vpop.f32.mrb[5].mxu1 }
 0x180   : > { %1513 = vmatprep.mubr.msk.f32.mxu0 %vm903_vm2, %v980_v15 }
 0x181   : > { %1514 = vmatmul.mubr.msk.f32.vlgmr.msra.gmra.mrb[4].mxu0 %vm903_vm2, %v1505_v14 }
 0x182   : > { %v1510_v16 = vpop.f32.mrb[6].mxu1 }
 0x183   : > { %v1058_v17 = vpop.f32.mrb[7].mxu1 }
 0x184   : > { %1516 = vmatprep.mubr.msk.f32.mxu0 %vm903_vm2, %v1058_v17 }
 0x185   : > { %1517 = vmatmul.mubr.msk.f32.gmra.mrb[6].mxu0 %vm903_vm2, %v1510_v16 }
 0x24c   : > { %v1497_v50 = vpop.f32.mrb[0].mxu0 }
 0x24d   : > { %v867_v51 = vmul.f32 2.0, %v1497_v50  ;;  %v847_v52 = vpop.f32.mrb[1].mxu0 }
 0x24e   : > { %v866_v53 = vmul.f32 2.0, %v847_v52 }
 0x24f   : > { %v871_v55 = vsub.f32 %v867_v51, %v2179_v19 }
 0x250   : > { %v1500_v54 = vpop.f32.mrb[2].mxu0  ;;  %v870_v58 = vsub.f32 %v866_v53, %v2184_v23  ;;  %v554_v53 = vlaneseq }
 0x251   : > { %v869_v56 = vmul.f32 2.0, %v1500_v54  ;;  %v857_v57 = vpop.f32.mrb[3].mxu0  ;;  %v875_v63 = vand.u32 2147483647, %v871_v55 }
 0x252   : > { %v868_v59 = vmul.f32 2.0, %v857_v57  ;;  %v874_v3 = vand.u32 2147483647, %v870_v58  ;;  %v555_v54 = vand.u32 127, %v554_v53 }
 0x253   : > { %v873_v60 = vsub.f32 %v869_v56, %v2186_v24 }
 0x254   : > { %v872_v61 = vsub.f32 %v868_v59, %v2188_v25  ;;  %v1515_v62 = vpop.f32.mrb[4].mxu0  ;;  %vm882_vm10 = vcmp.eq.s32.totalorder %v555_v54, 1  ;;  %vm590_vm11 = vcmp.eq.s32.totalorder %v555_v54, 0  ;;  %vm1183_vm12 = vcmp.eq.s32.totalorder %v555_v54, 2 }
 0x255   : > { %v877_v0 = vand.u32 2147483647, %v873_v60  ;;  %v1168_v1 = vmul.f32 4.0, %v1515_v62  ;;  %v1148_v2 = vpop.f32.mrb[5].mxu0 }
 0x256   : > { %v876_v4 = vand.u32 2147483647, %v872_v61  ;;  %v1167_v5 = vmul.f32 4.0, %v1148_v2 }
 0x257   : > { %v879_v6 = vadd.f32 %v877_v0, %v875_v63  ;;  %v1172_v9 = vsub.f32 %v1168_v1, %v2179_v19 }
 0x258   : > { %v878_v7 = vadd.f32 %v876_v4, %v874_v3  ;;  %v1518_v8 = vpop.f32.mrb[6].mxu0  ;;  %v1171_v13 = vsub.f32 %v1167_v5, %v2184_v23 }
 0x259   : > { %v1170_v10 = vmul.f32 4.0, %v1518_v8  ;;  %v1158_v11 = vpop.f32.mrb[7].mxu0  ;;  %v881_v12 = vsel %vm2203_vm8, %v879_v6, 0.0  ;;  %v1176_v21 = vand.u32 2147483647, %v1172_v9 }
 0x25a   : > { %v1169_v14 = vmul.f32 4.0, %v1158_v11  ;;  %v880_v15 = vsel %vm2199_vm7, %v878_v7, 0.0  ;;  %v884_v16 = vsel %vm591_vm9, %v881_v12, 0.0  ;;  %v1175_v26 = vand.u32 2147483647, %v1171_v13 }
 0x25b   : > { %v1174_v17 = vsub.f32 %v1170_v10, %v2186_v24  ;;  %v883_v18 = vsel %vm591_vm9, %v880_v15, 0.0 }
 0x25c   : > { %v1173_v20 = vsub.f32 %v1169_v14, %v2188_v25  ;;  %v885_v19 = vadd.f32 %v884_v16, %v883_v18  ;;  %v596_v25 = vpop.xlane.xlu0 %595 }
 0x25d   : > { %v1178_v22 = vand.u32 2147483647, %v1174_v17  ;;  %v597_v33 = vrot.slane %v596_v25, 4 }
 0x25e   : > { %v1177_v27 = vand.u32 2147483647, %v1173_v20  ;;  %886 = vadd.xlane.f32.xlu0 %v885_v19 }
 0x25f   : > { %v1180_v28 = vadd.f32 %v1178_v22, %v1176_v21  ;;  %v598_v34 = vadd.f32 %v597_v33, %v596_v25 }
 0x260   : > { %v1179_v23 = vadd.f32 %v1177_v27, %v1175_v26 }
 0x261   : > { %v1182_v29 = vsel %vm2203_vm8, %v1180_v28, 0.0  ;;  %v599_v35 = vrot.slane %v598_v34, 2 }
 0x262   : > { %v1181_v30 = vsel %vm2199_vm7, %v1179_v23, 0.0  ;;  %v1185_v24 = vsel %vm591_vm9, %v1182_v29, 0.0 }
 0x263   : > { %v1184_v31 = vsel %vm591_vm9, %v1181_v30, 0.0  ;;  %v600_v36 = vadd.f32 %v599_v35, %v598_v34 }
 0x264   : > { %v1186_v32 = vadd.f32 %v1185_v24, %v1184_v31 }
 0x265   : > { %v601_v37 = vrot.slane %v600_v36, 1 }
 0x266   : > { %1187 = vadd.xlane.f32.xlu1 %v1186_v32 }
 0x267   : > { %v602_v38 = vadd.f32 %v601_v37, %v600_v36 }
 0x269   : > { %1519 = vpush %v602_v38 }
 0x29a   : > { %s1520_s11 = spop %1519 }
 0x29b   : > { %v604_v56 = vstv %s1520_s11 }
 0x29c   : > { %v605_v58 = vsel %vm590_vm11, %v604_v56, 0.0 }
 0x2eb   : > { %v887_v39 = vpop.xlane.xlu0 %886 }
 0x2ec   : > { %v888_v40 = vrot.slane %v887_v39, 4 }
 0x2ee   : > { %v889_v42 = vadd.f32 %v888_v40, %v887_v39 }
 0x2f0   : > { %v890_v43 = vrot.slane %v889_v42, 2 }
 0x2f2   : > { %v891_v41 = vadd.f32 %v890_v43, %v889_v42 }
 0x2f3   : > { %v1188_v44 = vpop.xlane.xlu1 %1187 }
 0x2f4   : > { %v1189_v45 = vrot.slane %v1188_v44, 4  ;;  %v892_v46 = vrot.slane %v891_v41, 1 }
 0x2f6   : > { %v1190_v47 = vadd.f32 %v1189_v45, %v1188_v44  ;;  %v893_v48 = vadd.f32 %v892_v46, %v891_v41 }
 0x2f8   : > { %v1191_v49 = vrot.slane %v1190_v47, 2  ;;  %1521 = vpush %v893_v48 }
 0x2fa   : > { %v1192_v50 = vadd.f32 %v1191_v49, %v1190_v47 }
 0x2fc   : > { %v1193_v51 = vrot.slane %v1192_v50, 1 }
 0x2fe   : > { %v1194_v52 = vadd.f32 %v1193_v51, %v1192_v50 }
 0x300   : > { %1523 = vpush %v1194_v52 }
 0x329   : > { %s1522_s26 = spop %1521 }
 0x32a   : > { %v895_v55 = vstv %s1522_s26 }
 0x32b   : > { %v896_v57 = vsel %vm882_vm10, %v895_v55, 0.0 }
 0x32c   : > { %v897_v59 = vadd.f32 %v896_v57, %v605_v58 }
 0x331   : > { %s1524_s20 = spop %1523 }
 0x332   : > { %v1196_v60 = vstv %s1524_s20 }
 0x333   : > { %v1197_v61 = vsel %vm1183_vm12, %v1196_v60, 0.0 }
 0x334   : > { %v1198_v62 = vadd.f32 %v1197_v61, %v897_v59 }
 0x336   : > { %1199 = vst [vmem:[%s527_s28] sm:$0x1] %v1198_v62 }
 0x337   : > { %1743 = shalt.err (!%p1740_p0)
}
 0x338   : > { %s1744_s16 = scalar_lea.hbm %s2238_s22, 16  ;;  %s1748_s14 = scalar_lea.hbm %s2346_s1, 32 }
 0x339   : > { %p1745_p2 = scmp.ne.s32.totalorder %s2238_s22, %s1744_s16  ;;  %p1749_p4 = scmp.lt.u32.totalorder %s2238_s22, %s2346_s1 }
 0x33a   : > { %p1750_p11 = scmp.lt.u32.totalorder %s1748_s14, %s1744_s16  ;;  %p1752_p10 = scmp.lt.u32.totalorder %s1744_s16, %s2238_s22 }
 0x33b   : > { %p1746_p8 = pnand %p1745_p2, %p2347_p13 }
 0x33c   : > { %p1751_p5 = por %p1750_p11, %p1749_p4 }
 0x33d   : > { %p1747_p12 = pneg %p1746_p8 }
 0x33e   : > { %p1753_p3 = por %p1752_p10, %p1751_p5 }
 0x340   : > { %p1754_p1 = pnand %p1753_p3, %p1747_p12 }
 0x342   : > { %1757 = shalt.err (!%p1754_p1)
}
 0x343   : > { %1535 = dma.vmem_to_hbm [thread:$0]  (%p2347_p13), %s2240_s23, 16, %s2238_s22, %s1201_s12  }
 0x344 PF: > { %s2348_s11 = sld [smem:[#allocation15_spill]]  ;;  %s2349_s26 = sld [smem:[#allocation21_spill]] }
 0x345   : > { %s2350_s9 = sld [smem:[#allocation17_spill]] }
 0x34a   : > { %s1226_s20 = sand.u32 1, %s2348_s11   ;;  %p2351_p7 = scmp.ne.s32.totalorder %s2349_s26, 0 }
 0x34b   : > { %p2352_p9 = scmp.ge.s32.totalorder %s2350_s9, 2  ;;  %s1227_s28 = scalar_lea.sflag [#allocation4], %s1226_s20 }
 0x34d   : > { %p1552_p6 = pnand %p2352_p9, %p2351_p7 }
 0x34f   : > { %1795 = dma.done.wait (!%p1552_p6), %s1227_s28, 16  }
 0x350   : > { %1797 = vsyncadd (!%p1552_p6), %s1227_s28, 4294967280  ;;  %s29_s14 = sadd.s32 1, %s2350_s9   ;;  %s2353_s18 = sld [smem:[#allocation16_spill]] }
 0x351   : > { %p26_p0 = scmp.ge.s32.totalorder %s29_s14, 4   ;;  %s2354_s11 = sld [smem:[#allocation19_spill]] }
 0x352   : > { %s2355_s15 = sld [smem:[#allocation18_spill]]  ;;  %s2356_s30 = smov %s1804_s10 }
 0x353   : > { %s2358_s12 = smov %s1816_s13  ;;  %28 = sbr.rel (!%p26_p0) target bundleno = 13 (0xd), region = 141 }
 0x356   : > { %s2357_s10 = smov %s2353_s18 }
 0x358   : > { %s2359_s13 = smov %s2355_s15 }
 0x35a   :  { %1231 = vsyncpa [#allocation3], 1 }
 0x35b   :  { %1233 = vsyncpa [#allocation3 + $0x1], 1 }
 0x35c   :  { %1234 = vsyncpa [#allocation6], 1 }
 0x35d   :  { %1236 = vsyncpa [#allocation6 + $0x1], 1 }
 0x35e   :  { %1237 = vsyncpa [#allocation9], 1 }
 0x35f   :  { %1238 = vsyncpa [#allocation4], 1 }
 0x360   :  { %1240 = vsyncpa [#allocation4 + $0x1], 1 }

</bundles_post_ra>
